<compile_context>
chip_gen: v6e
topology: v6e:2x2x1
jax: 0.10.0
libtpu: 0.0.40
codegen_flags: <defaults>
</compile_context>

<pallas_src>
import numpy as np
import jax
import jax.numpy as jnp
from jax import lax
from jax.experimental import pallas as pl
from jax.experimental.pallas import tpu as pltpu

HIDDEN = 64
EMBED = 32
VOCAB = 10
OUT = 10
OUT_PAD = 128      # lane-dense padded output width (sliced back to OUT outside)
B_SUBLANE = 8      # batch padded to a multiple of the 8-row sublane dimension


def rnn_dense_kernel(x_ref,     # [S, Bp, 64]    time-major input
                     w0_ref,    # [128, 64]      fused [W_ih0.T ; W_hh0.T]
                     b0_ref,    # [1, 64]        b_ih0 + b_hh0
                     w1_ref,    # [128, 64]      fused [W_ih1.T ; W_hh1.T]
                     b1_ref,    # [1, 64]        b_ih1 + b_hh1
                     wd_ref,    # [64, OUT_PAD]  dense weight, zero-padded lanes
                     bd_ref,    # [1, OUT_PAD]   dense bias,   zero-padded lanes
                     out_ref,   # [S*Bp, OUT_PAD]
                     hist_ref): # scratch [S*Bp, 64]: top-layer hidden history
    S, Bp, _ = x_ref.shape

    # Hoist all weights / biases out of the time loop; pre-broadcast the biases
    # once so no per-iteration broadcast_in_dim is emitted.
    w0 = w0_ref[...]
    w1 = w1_ref[...]
    b0 = jnp.broadcast_to(b0_ref[...], (Bp, HIDDEN))
    b1 = jnp.broadcast_to(b1_ref[...], (Bp, HIDDEN))

    h_init = jnp.zeros((Bp, HIDDEN), jnp.float32)

    def step(t, carry):
        h0, h1 = carry
        x_t = x_ref[t]                                     # [Bp, 64]
        # layer 0: one fused MXU matmul  tanh([x_t, h0] @ [Wih0.T; Whh0.T] + b0)
        xh0 = jnp.concatenate([x_t, h0], axis=1)           # [Bp, 128]
        h0_new = jnp.tanh(
            jnp.dot(xh0, w0, preferred_element_type=jnp.float32) + b0)
        # layer 1: one fused MXU matmul
        xh1 = jnp.concatenate([h0_new, h1], axis=1)        # [Bp, 128]
        h1_new = jnp.tanh(
            jnp.dot(xh1, w1, preferred_element_type=jnp.float32) + b1)
        # Record the top-layer output; the dense head runs after the loop.
        row = pl.multiple_of(t * Bp, B_SUBLANE)
        hist_ref[pl.ds(row, Bp), :] = h1_new
        return (h0_new, h1_new)

    # Short, fixed trip count: fully unroll so the scheduler can overlap MXU
    # pushes, tanh (EUP) and history stores across adjacent steps.
    lax.fori_loop(0, S, step, (h_init, h_init), unroll=True)

    # Dense head outside the recurrence: one well-shaped [S*Bp,64]@[64,128]
    # matmul and a single lane-dense store (instead of S masked 10-lane stores).
    logits = (jnp.dot(hist_ref[...], wd_ref[...],
                      preferred_element_type=jnp.float32)
              + bd_ref[...])                               # [S*Bp, OUT_PAD]
    out_ref[...] = logits


def init_params(key):
    """Deterministic synthetic parameters with PyTorch-equivalent shapes."""
    ks = jax.random.split(key, 12)
    k = 1.0 / np.sqrt(HIDDEN)
    u = lambda kk, shape: jax.random.uniform(kk, shape, jnp.float32, -k, k)
    params = {
        "embed":  jax.random.normal(ks[0], (VOCAB, EMBED), jnp.float32),  # N(0,1)
        "w_ih0":  u(ks[1], (HIDDEN, HIDDEN)),   # [out, in] like PyTorch
        "w_hh0":  u(ks[2], (HIDDEN, HIDDEN)),
        "b_ih0":  u(ks[3], (HIDDEN,)),
        "b_hh0":  u(ks[4], (HIDDEN,)),
        "w_ih1":  u(ks[5], (HIDDEN, HIDDEN)),
        "w_hh1":  u(ks[6], (HIDDEN, HIDDEN)),
        "b_ih1":  u(ks[7], (HIDDEN,)),
        "b_hh1":  u(ks[8], (HIDDEN,)),
        "w_dense": u(ks[9], (OUT, HIDDEN)),     # [out, in] like nn.Linear
        "b_dense": u(ks[10], (OUT,)),
    }
    return params


def model_forward(num1, num2, params):
    # --- glue (plain JAX): embedding lookups, concat, transpose -------------
    emb = params["embed"]
    e1 = emb[num1]                                        # [B, S, 32]
    e2 = emb[num2]                                        # [B, S, 32]
    x = jnp.concatenate([e1, e2], axis=2)                 # [B, S, 64]
    x = jnp.transpose(x, (1, 0, 2)).astype(jnp.float32)   # [S, B, 64] time-major
    S, B, _ = x.shape

    # Pad batch to a multiple of 8 so every [Bp, 64] tile is sublane-dense.
    Bp = ((B + B_SUBLANE - 1) // B_SUBLANE) * B_SUBLANE
    if Bp != B:
        x = jnp.pad(x, ((0, 0), (0, Bp - B), (0, 0)))

    # Fuse [W_ih ; W_hh] per layer (pre-transposed to [in, out]); fold biases.
    w0 = jnp.concatenate([params["w_ih0"].T, params["w_hh0"].T], axis=0)  # [128,64]
    b0 = (params["b_ih0"] + params["b_hh0"]).reshape(1, HIDDEN)
    w1 = jnp.concatenate([params["w_ih1"].T, params["w_hh1"].T], axis=0)  # [128,64]
    b1 = (params["b_ih1"] + params["b_hh1"]).reshape(1, HIDDEN)

    # Zero-pad the dense head to 128 output lanes (sliced back afterwards).
    wd = jnp.zeros((HIDDEN, OUT_PAD), jnp.float32).at[:, :OUT].set(params["w_dense"].T)
    bd = jnp.zeros((1, OUT_PAD), jnp.float32).at[:, :OUT].set(params["b_dense"])

    vmem = pl.BlockSpec(memory_space=pltpu.MemorySpace.VMEM)
    out = pl.pallas_call(
        rnn_dense_kernel,
        out_shape=jax.ShapeDtypeStruct((S * Bp, OUT_PAD), jnp.float32),
        in_specs=[vmem] * 7,
        out_specs=vmem,
        scratch_shapes=[pltpu.VMEM((S * Bp, HIDDEN), jnp.float32)],
    )(x, w0, b0, w1, b1, wd, bd)

    out = out.reshape(S, Bp, OUT_PAD)[:, :B, :OUT]        # drop batch / lane pad
    return jnp.transpose(out, (1, 0, 2))                  # [B, S, 10]


def reference_forward(num1, num2, params):
    """Pure-JAX reference replicating torch.nn.RNN(64, 64, 2) + Linear."""
    emb = params["embed"]
    x = jnp.concatenate([emb[num1], emb[num2]], axis=2)   # [B, S, 64]
    x = jnp.transpose(x, (1, 0, 2))                       # [S, B, 64]
    B = x.shape[1]

    def layer(xs, w_ih, w_hh, b_ih, b_hh):
        def step(h, x_t):
            h_new = jnp.tanh(x_t @ w_ih.T + b_ih + h @ w_hh.T + b_hh)
            return h_new, h_new
        h0 = jnp.zeros((B, HIDDEN), jnp.float32)
        _, ys = lax.scan(step, h0, xs)
        return ys

    y0 = layer(x, params["w_ih0"], params["w_hh0"], params["b_ih0"], params["b_hh0"])
    y1 = layer(y0, params["w_ih1"], params["w_hh1"], params["b_ih1"], params["b_hh1"])
    logits = y1 @ params["w_dense"].T + params["b_dense"]     # [S, B, 10]
    return jnp.transpose(logits, (1, 0, 2))                   # [B, S, 10]


if __name__ == "__main__":
    key = jax.random.PRNGKey(0)
    kp, k1, k2 = jax.random.split(key, 3)

    params = init_params(kp)

    B, S = 2, 8
    num1 = jax.random.randint(k1, (B, S), 0, VOCAB, dtype=jnp.int32)
    num2 = jax.random.randint(k2, (B, S), 0, VOCAB, dtype=jnp.int32)

    logits = jax.block_until_ready(model_forward(num1, num2, params))
    ref = jax.block_until_ready(reference_forward(num1, num2, params))

    assert logits.shape == (B, S, OUT), logits.shape
    # Slightly relaxed tolerance: the fused K=128 MXU contraction changes the
    # f32 summation order vs. the two separate K=64 reference matmuls.
    np.testing.assert_allclose(np.asarray(logits), np.asarray(ref),
                               rtol=1e-4, atol=1e-4)
    print("KERNEL_OK")
</pallas_src>

<mosaic_0001>
module attributes {stable_mosaic.version = 11 : i64} {
  func.func @rnn_dense_kernel(%arg0: memref<8x8x64xf32, #tpu.memory_space<vmem>>, %arg1: memref<128x64xf32, #tpu.memory_space<vmem>>, %arg2: memref<1x64xf32, #tpu.memory_space<vmem>>, %arg3: memref<128x64xf32, #tpu.memory_space<vmem>>, %arg4: memref<1x64xf32, #tpu.memory_space<vmem>>, %arg5: memref<64x128xf32, #tpu.memory_space<vmem>>, %arg6: memref<1x128xf32, #tpu.memory_space<vmem>>, %arg7: memref<64x128xf32, #tpu.memory_space<vmem>>, %arg8: memref<64x64xf32, #tpu.memory_space<vmem>>) attributes {dimension_semantics = [], scalar_prefetch = 0 : i64, scratch_operands = 1 : i64, tpu.core_type = #tpu.core_type<tc>} {
    %c0 = arith.constant 0 : index
    %c0_0 = arith.constant 0 : index
    %0 = vector.load %arg1[%c0, %c0_0] : memref<128x64xf32, #tpu.memory_space<vmem>>, vector<128x64xf32>
    %c0_1 = arith.constant 0 : index
    %c0_2 = arith.constant 0 : index
    %1 = vector.load %arg3[%c0_1, %c0_2] : memref<128x64xf32, #tpu.memory_space<vmem>>, vector<128x64xf32>
    %c0_3 = arith.constant 0 : index
    %c0_4 = arith.constant 0 : index
    %2 = vector.load %arg2[%c0_3, %c0_4] : memref<1x64xf32, #tpu.memory_space<vmem>>, vector<1x64xf32>
    %3 = vector.shape_cast %2 : vector<1x64xf32> to vector<1x64xf32>
    %4 = vector.broadcast %3 : vector<1x64xf32> to vector<8x64xf32>
    %c0_5 = arith.constant 0 : index
    %c0_6 = arith.constant 0 : index
    %5 = vector.load %arg4[%c0_5, %c0_6] : memref<1x64xf32, #tpu.memory_space<vmem>>, vector<1x64xf32>
    %6 = vector.shape_cast %5 : vector<1x64xf32> to vector<1x64xf32>
    %7 = vector.broadcast %6 : vector<1x64xf32> to vector<8x64xf32>
    %cst = arith.constant 0.000000e+00 : f32
    %8 = vector.broadcast %cst : f32 to vector<8x64xf32>
    %c0_i32 = arith.constant 0 : i32
    %9 = arith.index_cast %c0_i32 : i32 to index
    %c0_7 = arith.constant 0 : index
    %c0_8 = arith.constant 0 : index
    %10 = vector.load %arg0[%9, %c0_7, %c0_8] : memref<8x8x64xf32, #tpu.memory_space<vmem>>, vector<1x8x64xf32>
    %11 = vector.shape_cast %10 : vector<1x8x64xf32> to vector<8x64xf32>
    %12 = tpu.concatenate %11, %8 in 1 : vector<8x64xf32>, vector<8x64xf32> -> vector<8x128xf32>
    %cst_9 = arith.constant dense<0.000000e+00> : vector<8x64xf32>
    %13 = tpu.matmul %12, %0, %cst_9 {dimension_numbers = #tpu.dot_dimension_numbers<[1], [0], [0], [1], [0, 0, 1, 1], [], []>} : vector<8x128xf32>, vector<128x64xf32>, vector<8x64xf32> -> vector<8x64xf32>
    %14 = arith.addf %13, %4 : vector<8x64xf32>
    %15 = math.tanh %14 : vector<8x64xf32>
    %16 = tpu.concatenate %15, %8 in 1 : vector<8x64xf32>, vector<8x64xf32> -> vector<8x128xf32>
    %cst_10 = arith.constant dense<0.000000e+00> : vector<8x64xf32>
    %17 = tpu.matmul %16, %1, %cst_10 {dimension_numbers = #tpu.dot_dimension_numbers<[1], [0], [0], [1], [0, 0, 1, 1], [], []>} : vector<8x128xf32>, vector<128x64xf32>, vector<8x64xf32> -> vector<8x64xf32>
    %18 = arith.addf %17, %7 : vector<8x64xf32>
    %19 = math.tanh %18 : vector<8x64xf32>
    %c8_i32 = arith.constant 8 : i32
    %20 = arith.muli %c0_i32, %c8_i32 : i32
    %21 = tpu.assume_multiple %20, 8 : i32
    %22 = arith.index_cast %21 : i32 to index
    %c0_11 = arith.constant 0 : index
    %23 = vector.load %arg8[%22, %c0_11] : memref<64x64xf32, #tpu.memory_space<vmem>>, vector<8x64xf32>
    tpu.vector_store %arg8[%22, %c0_11], %19 {strides = array<i32>} : memref<64x64xf32, #tpu.memory_space<vmem>>, vector<8x64xf32>,
    %c1_i32 = arith.constant 1 : i32
    %24 = arith.index_cast %c1_i32 : i32 to index
    %c0_12 = arith.constant 0 : index
    %c0_13 = arith.constant 0 : index
    %25 = vector.load %arg0[%24, %c0_12, %c0_13] : memref<8x8x64xf32, #tpu.memory_space<vmem>>, vector<1x8x64xf32>
    %26 = vector.shape_cast %25 : vector<1x8x64xf32> to vector<8x64xf32>
    %27 = tpu.concatenate %26, %15 in 1 : vector<8x64xf32>, vector<8x64xf32> -> vector<8x128xf32>
    %cst_14 = arith.constant dense<0.000000e+00> : vector<8x64xf32>
    %28 = tpu.matmul %27, %0, %cst_14 {dimension_numbers = #tpu.dot_dimension_numbers<[1], [0], [0], [1], [0, 0, 1, 1], [], []>} : vector<8x128xf32>, vector<128x64xf32>, vector<8x64xf32> -> vector<8x64xf32>
    %29 = arith.addf %28, %4 : vector<8x64xf32>
    %30 = math.tanh %29 : vector<8x64xf32>
    %31 = tpu.concatenate %30, %19 in 1 : vector<8x64xf32>, vector<8x64xf32> -> vector<8x128xf32>
    %cst_15 = arith.constant dense<0.000000e+00> : vector<8x64xf32>
    %32 = tpu.matmul %31, %1, %cst_15 {dimension_numbers = #tpu.dot_dimension_numbers<[1], [0], [0], [1], [0, 0, 1, 1], [], []>} : vector<8x128xf32>, vector<128x64xf32>, vector<8x64xf32> -> vector<8x64xf32>
    %33 = arith.addf %32, %7 : vector<8x64xf32>
    %34 = math.tanh %33 : vector<8x64xf32>
    %c8_i32_16 = arith.constant 8 : i32
    %35 = arith.muli %c1_i32, %c8_i32_16 : i32
    %36 = tpu.assume_multiple %35, 8 : i32
    %37 = arith.index_cast %36 : i32 to index
    %c0_17 = arith.constant 0 : index
    %38 = vector.load %arg8[%37, %c0_17] : memref<64x64xf32, #tpu.memory_space<vmem>>, vector<8x64xf32>
    tpu.vector_store %arg8[%37, %c0_17], %34 {strides = array<i32>} : memref<64x64xf32, #tpu.memory_space<vmem>>, vector<8x64xf32>,
    %c2_i32 = arith.constant 2 : i32
    %39 = arith.index_cast %c2_i32 : i32 to index
    %c0_18 = arith.constant 0 : index
    %c0_19 = arith.constant 0 : index
    %40 = vector.load %arg0[%39, %c0_18, %c0_19] : memref<8x8x64xf32, #tpu.memory_space<vmem>>, vector<1x8x64xf32>
    %41 = vector.shape_cast %40 : vector<1x8x64xf32> to vector<8x64xf32>
    %42 = tpu.concatenate %41, %30 in 1 : vector<8x64xf32>, vector<8x64xf32> -> vector<8x128xf32>
    %cst_20 = arith.constant dense<0.000000e+00> : vector<8x64xf32>
    %43 = tpu.matmul %42, %0, %cst_20 {dimension_numbers = #tpu.dot_dimension_numbers<[1], [0], [0], [1], [0, 0, 1, 1], [], []>} : vector<8x128xf32>, vector<128x64xf32>, vector<8x64xf32> -> vector<8x64xf32>
    %44 = arith.addf %43, %4 : vector<8x64xf32>
    %45 = math.tanh %44 : vector<8x64xf32>
    %46 = tpu.concatenate %45, %34 in 1 : vector<8x64xf32>, vector<8x64xf32> -> vector<8x128xf32>
    %cst_21 = arith.constant dense<0.000000e+00> : vector<8x64xf32>
    %47 = tpu.matmul %46, %1, %cst_21 {dimension_numbers = #tpu.dot_dimension_numbers<[1], [0], [0], [1], [0, 0, 1, 1], [], []>} : vector<8x128xf32>, vector<128x64xf32>, vector<8x64xf32> -> vector<8x64xf32>
    %48 = arith.addf %47, %7 : vector<8x64xf32>
    %49 = math.tanh %48 : vector<8x64xf32>
    %c8_i32_22 = arith.constant 8 : i32
    %50 = arith.muli %c2_i32, %c8_i32_22 : i32
    %51 = tpu.assume_multiple %50, 8 : i32
    %52 = arith.index_cast %51 : i32 to index
    %c0_23 = arith.constant 0 : index
    %53 = vector.load %arg8[%52, %c0_23] : memref<64x64xf32, #tpu.memory_space<vmem>>, vector<8x64xf32>
    tpu.vector_store %arg8[%52, %c0_23], %49 {strides = array<i32>} : memref<64x64xf32, #tpu.memory_space<vmem>>, vector<8x64xf32>,
    %c3_i32 = arith.constant 3 : i32
    %54 = arith.index_cast %c3_i32 : i32 to index
    %c0_24 = arith.constant 0 : index
    %c0_25 = arith.constant 0 : index
    %55 = vector.load %arg0[%54, %c0_24, %c0_25] : memref<8x8x64xf32, #tpu.memory_space<vmem>>, vector<1x8x64xf32>
    %56 = vector.shape_cast %55 : vector<1x8x64xf32> to vector<8x64xf32>
    %57 = tpu.concatenate %56, %45 in 1 : vector<8x64xf32>, vector<8x64xf32> -> vector<8x128xf32>
    %cst_26 = arith.constant dense<0.000000e+00> : vector<8x64xf32>
    %58 = tpu.matmul %57, %0, %cst_26 {dimension_numbers = #tpu.dot_dimension_numbers<[1], [0], [0], [1], [0, 0, 1, 1], [], []>} : vector<8x128xf32>, vector<128x64xf32>, vector<8x64xf32> -> vector<8x64xf32>
    %59 = arith.addf %58, %4 : vector<8x64xf32>
    %60 = math.tanh %59 : vector<8x64xf32>
    %61 = tpu.concatenate %60, %49 in 1 : vector<8x64xf32>, vector<8x64xf32> -> vector<8x128xf32>
    %cst_27 = arith.constant dense<0.000000e+00> : vector<8x64xf32>
    %62 = tpu.matmul %61, %1, %cst_27 {dimension_numbers = #tpu.dot_dimension_numbers<[1], [0], [0], [1], [0, 0, 1, 1], [], []>} : vector<8x128xf32>, vector<128x64xf32>, vector<8x64xf32> -> vector<8x64xf32>
    %63 = arith.addf %62, %7 : vector<8x64xf32>
    %64 = math.tanh %63 : vector<8x64xf32>
    %c8_i32_28 = arith.constant 8 : i32
    %65 = arith.muli %c3_i32, %c8_i32_28 : i32
    %66 = tpu.assume_multiple %65, 8 : i32
    %67 = arith.index_cast %66 : i32 to index
    %c0_29 = arith.constant 0 : index
    %68 = vector.load %arg8[%67, %c0_29] : memref<64x64xf32, #tpu.memory_space<vmem>>, vector<8x64xf32>
    tpu.vector_store %arg8[%67, %c0_29], %64 {strides = array<i32>} : memref<64x64xf32, #tpu.memory_space<vmem>>, vector<8x64xf32>,
    %c4_i32 = arith.constant 4 : i32
    %69 = arith.index_cast %c4_i32 : i32 to index
    %c0_30 = arith.constant 0 : index
    %c0_31 = arith.constant 0 : index
    %70 = vector.load %arg0[%69, %c0_30, %c0_31] : memref<8x8x64xf32, #tpu.memory_space<vmem>>, vector<1x8x64xf32>
    %71 = vector.shape_cast %70 : vector<1x8x64xf32> to vector<8x64xf32>
    %72 = tpu.concatenate %71, %60 in 1 : vector<8x64xf32>, vector<8x64xf32> -> vector<8x128xf32>
    %cst_32 = arith.constant dense<0.000000e+00> : vector<8x64xf32>
    %73 = tpu.matmul %72, %0, %cst_32 {dimension_numbers = #tpu.dot_dimension_numbers<[1], [0], [0], [1], [0, 0, 1, 1], [], []>} : vector<8x128xf32>, vector<128x64xf32>, vector<8x64xf32> -> vector<8x64xf32>
    %74 = arith.addf %73, %4 : vector<8x64xf32>
    %75 = math.tanh %74 : vector<8x64xf32>
    %76 = tpu.concatenate %75, %64 in 1 : vector<8x64xf32>, vector<8x64xf32> -> vector<8x128xf32>
    %cst_33 = arith.constant dense<0.000000e+00> : vector<8x64xf32>
    %77 = tpu.matmul %76, %1, %cst_33 {dimension_numbers = #tpu.dot_dimension_numbers<[1], [0], [0], [1], [0, 0, 1, 1], [], []>} : vector<8x128xf32>, vector<128x64xf32>, vector<8x64xf32> -> vector<8x64xf32>
    %78 = arith.addf %77, %7 : vector<8x64xf32>
    %79 = math.tanh %78 : vector<8x64xf32>
    %c8_i32_34 = arith.constant 8 : i32
    %80 = arith.muli %c4_i32, %c8_i32_34 : i32
    %81 = tpu.assume_multiple %80, 8 : i32
    %82 = arith.index_cast %81 : i32 to index
    %c0_35 = arith.constant 0 : index
    %83 = vector.load %arg8[%82, %c0_35] : memref<64x64xf32, #tpu.memory_space<vmem>>, vector<8x64xf32>
    tpu.vector_store %arg8[%82, %c0_35], %79 {strides = array<i32>} : memref<64x64xf32, #tpu.memory_space<vmem>>, vector<8x64xf32>,
    %c5_i32 = arith.constant 5 : i32
    %84 = arith.index_cast %c5_i32 : i32 to index
    %c0_36 = arith.constant 0 : index
    %c0_37 = arith.constant 0 : index
    %85 = vector.load %arg0[%84, %c0_36, %c0_37] : memref<8x8x64xf32, #tpu.memory_space<vmem>>, vector<1x8x64xf32>
    %86 = vector.shape_cast %85 : vector<1x8x64xf32> to vector<8x64xf32>
    %87 = tpu.concatenate %86, %75 in 1 : vector<8x64xf32>, vector<8x64xf32> -> vector<8x128xf32>
    %cst_38 = arith.constant dense<0.000000e+00> : vector<8x64xf32>
    %88 = tpu.matmul %87, %0, %cst_38 {dimension_numbers = #tpu.dot_dimension_numbers<[1], [0], [0], [1], [0, 0, 1, 1], [], []>} : vector<8x128xf32>, vector<128x64xf32>, vector<8x64xf32> -> vector<8x64xf32>
    %89 = arith.addf %88, %4 : vector<8x64xf32>
    %90 = math.tanh %89 : vector<8x64xf32>
    %91 = tpu.concatenate %90, %79 in 1 : vector<8x64xf32>, vector<8x64xf32> -> vector<8x128xf32>
    %cst_39 = arith.constant dense<0.000000e+00> : vector<8x64xf32>
    %92 = tpu.matmul %91, %1, %cst_39 {dimension_numbers = #tpu.dot_dimension_numbers<[1], [0], [0], [1], [0, 0, 1, 1], [], []>} : vector<8x128xf32>, vector<128x64xf32>, vector<8x64xf32> -> vector<8x64xf32>
    %93 = arith.addf %92, %7 : vector<8x64xf32>
    %94 = math.tanh %93 : vector<8x64xf32>
    %c8_i32_40 = arith.constant 8 : i32
    %95 = arith.muli %c5_i32, %c8_i32_40 : i32
    %96 = tpu.assume_multiple %95, 8 : i32
    %97 = arith.index_cast %96 : i32 to index
    %c0_41 = arith.constant 0 : index
    %98 = vector.load %arg8[%97, %c0_41] : memref<64x64xf32, #tpu.memory_space<vmem>>, vector<8x64xf32>
    tpu.vector_store %arg8[%97, %c0_41], %94 {strides = array<i32>} : memref<64x64xf32, #tpu.memory_space<vmem>>, vector<8x64xf32>,
    %c6_i32 = arith.constant 6 : i32
    %99 = arith.index_cast %c6_i32 : i32 to index
    %c0_42 = arith.constant 0 : index
    %c0_43 = arith.constant 0 : index
    %100 = vector.load %arg0[%99, %c0_42, %c0_43] : memref<8x8x64xf32, #tpu.memory_space<vmem>>, vector<1x8x64xf32>
    %101 = vector.shape_cast %100 : vector<1x8x64xf32> to vector<8x64xf32>
    %102 = tpu.concatenate %101, %90 in 1 : vector<8x64xf32>, vector<8x64xf32> -> vector<8x128xf32>
    %cst_44 = arith.constant dense<0.000000e+00> : vector<8x64xf32>
    %103 = tpu.matmul %102, %0, %cst_44 {dimension_numbers = #tpu.dot_dimension_numbers<[1], [0], [0], [1], [0, 0, 1, 1], [], []>} : vector<8x128xf32>, vector<128x64xf32>, vector<8x64xf32> -> vector<8x64xf32>
    %104 = arith.addf %103, %4 : vector<8x64xf32>
    %105 = math.tanh %104 : vector<8x64xf32>
    %106 = tpu.concatenate %105, %94 in 1 : vector<8x64xf32>, vector<8x64xf32> -> vector<8x128xf32>
    %cst_45 = arith.constant dense<0.000000e+00> : vector<8x64xf32>
    %107 = tpu.matmul %106, %1, %cst_45 {dimension_numbers = #tpu.dot_dimension_numbers<[1], [0], [0], [1], [0, 0, 1, 1], [], []>} : vector<8x128xf32>, vector<128x64xf32>, vector<8x64xf32> -> vector<8x64xf32>
    %108 = arith.addf %107, %7 : vector<8x64xf32>
    %109 = math.tanh %108 : vector<8x64xf32>
    %c8_i32_46 = arith.constant 8 : i32
    %110 = arith.muli %c6_i32, %c8_i32_46 : i32
    %111 = tpu.assume_multiple %110, 8 : i32
    %112 = arith.index_cast %111 : i32 to index
    %c0_47 = arith.constant 0 : index
    %113 = vector.load %arg8[%112, %c0_47] : memref<64x64xf32, #tpu.memory_space<vmem>>, vector<8x64xf32>
    tpu.vector_store %arg8[%112, %c0_47], %109 {strides = array<i32>} : memref<64x64xf32, #tpu.memory_space<vmem>>, vector<8x64xf32>,
    %c7_i32 = arith.constant 7 : i32
    %114 = arith.index_cast %c7_i32 : i32 to index
    %c0_48 = arith.constant 0 : index
    %c0_49 = arith.constant 0 : index
    %115 = vector.load %arg0[%114, %c0_48, %c0_49] : memref<8x8x64xf32, #tpu.memory_space<vmem>>, vector<1x8x64xf32>
    %116 = vector.shape_cast %115 : vector<1x8x64xf32> to vector<8x64xf32>
    %117 = tpu.concatenate %116, %105 in 1 : vector<8x64xf32>, vector<8x64xf32> -> vector<8x128xf32>
    %cst_50 = arith.constant dense<0.000000e+00> : vector<8x64xf32>
    %118 = tpu.matmul %117, %0, %cst_50 {dimension_numbers = #tpu.dot_dimension_numbers<[1], [0], [0], [1], [0, 0, 1, 1], [], []>} : vector<8x128xf32>, vector<128x64xf32>, vector<8x64xf32> -> vector<8x64xf32>
    %119 = arith.addf %118, %4 : vector<8x64xf32>
    %120 = math.tanh %119 : vector<8x64xf32>
    %121 = tpu.concatenate %120, %109 in 1 : vector<8x64xf32>, vector<8x64xf32> -> vector<8x128xf32>
    %cst_51 = arith.constant dense<0.000000e+00> : vector<8x64xf32>
    %122 = tpu.matmul %121, %1, %cst_51 {dimension_numbers = #tpu.dot_dimension_numbers<[1], [0], [0], [1], [0, 0, 1, 1], [], []>} : vector<8x128xf32>, vector<128x64xf32>, vector<8x64xf32> -> vector<8x64xf32>
    %123 = arith.addf %122, %7 : vector<8x64xf32>
    %124 = math.tanh %123 : vector<8x64xf32>
    %c8_i32_52 = arith.constant 8 : i32
    %125 = arith.muli %c7_i32, %c8_i32_52 : i32
    %126 = tpu.assume_multiple %125, 8 : i32
    %127 = arith.index_cast %126 : i32 to index
    %c0_53 = arith.constant 0 : index
    %128 = vector.load %arg8[%127, %c0_53] : memref<64x64xf32, #tpu.memory_space<vmem>>, vector<8x64xf32>
    tpu.vector_store %arg8[%127, %c0_53], %124 {strides = array<i32>} : memref<64x64xf32, #tpu.memory_space<vmem>>, vector<8x64xf32>,
    %c8_i32_54 = arith.constant 8 : i32
    %c0_55 = arith.constant 0 : index
    %c0_56 = arith.constant 0 : index
    %129 = vector.load %arg8[%c0_55, %c0_56] : memref<64x64xf32, #tpu.memory_space<vmem>>, vector<64x64xf32>
    %c0_57 = arith.constant 0 : index
    %c0_58 = arith.constant 0 : index
    %130 = vector.load %arg5[%c0_57, %c0_58] : memref<64x128xf32, #tpu.memory_space<vmem>>, vector<64x128xf32>
    %cst_59 = arith.constant dense<0.000000e+00> : vector<64x128xf32>
    %131 = tpu.matmul %129, %130, %cst_59 {dimension_numbers = #tpu.dot_dimension_numbers<[1], [0], [0], [1], [0, 0, 1, 1], [], []>} : vector<64x64xf32>, vector<64x128xf32>, vector<64x128xf32> -> vector<64x128xf32>
    %c0_60 = arith.constant 0 : index
    %c0_61 = arith.constant 0 : index
    %132 = vector.load %arg6[%c0_60, %c0_61] : memref<1x128xf32, #tpu.memory_space<vmem>>, vector<1x128xf32>
    %133 = vector.broadcast %132 : vector<1x128xf32> to vector<64x128xf32>
    %134 = arith.addf %131, %133 : vector<64x128xf32>
    %c0_62 = arith.constant 0 : index
    %c0_63 = arith.constant 0 : index
    %135 = vector.load %arg7[%c0_62, %c0_63] : memref<64x128xf32, #tpu.memory_space<vmem>>, vector<64x128xf32>
    tpu.vector_store %arg7[%c0_62, %c0_63], %134 {strides = array<i32>} : memref<64x128xf32, #tpu.memory_space<vmem>>, vector<64x128xf32>,
    return
  }
}

</mosaic_0001>

<bundles_post_ra>
// kernel: tpu_custom_call.1
= control target key start
LH: loop header
LB: loop body
LE: loop exit
PB: predicated region body
PF: predicated region fallthrough
CT: control target
= control target key end

     0   :  { %v2494_v1 = vmov 0.0   ;;  %vm2495_vm0 = vmmov 0   ;;  %s3485_s0 = inlined_call_operand.vmem [shape: f32[8,8,64], index: 0, kind: input, shape index: {}]   ;;  %s3486_s1 = inlined_call_operand.vmem [shape: f32[128,64], index: 1, kind: input, shape index: {}]   ;;  %s3487_s2 = inlined_call_operand.vmem [shape: f32[1,64], index: 2, kind: input, shape index: {}]   ;;  %s3488_s3 = inlined_call_operand.vmem [shape: f32[128,64], index: 3, kind: input, shape index: {}]   ;;  %s3489_s4 = inlined_call_operand.vmem [shape: f32[1,64], index: 4, kind: input, shape index: {}]   ;;  %s3490_s5 = inlined_call_operand.vmem [shape: f32[64,128], index: 5, kind: input, shape index: {}]   ;;  %s3491_s6 = inlined_call_operand.vmem [shape: f32[1,128], index: 6, kind: input, shape index: {}]   ;;  %s3492_s7 = inlined_call_operand.hbm [shape: f32[64,128], index: 7, kind: output, shape index: {}]  }
   0x1   :  { %v2543_v0 = vld [vmem:[%s3486_s1 + $0x78] sm:$0xff]  ;;  %1796 = vmatprep.subr.mxu0 %v2494_v1  ;;  %v2549_v2 = vld [vmem:[%s3486_s1 + $0x70] sm:$0xff]  ;;  %1828 = vmatprep.mubr.msk.f32.mxu0 %vm2495_vm0, %v2494_v1  ;;  %v2559_v3 = vld [vmem:[%s3486_s1 + $0x68] sm:$0xff] }
   0x2   :  { %1797 = vmatpush3.msra.mxu0 %v2543_v0  ;;  %1831 = vmatprep.subr.mxu1 %v2494_v1  ;;  %v2568_v4 = vld [vmem:[%s3486_s1 + $0x60] sm:$0xff]  ;;  %v2573_v5 = vld [vmem:[%s3488_s3 + $0x78] sm:$0xff]  ;;  %v2580_v6 = vld [vmem:[%s3488_s3 + $0x70] sm:$0xff] }
   0x3   :  { %1798 = vmatprep.subr.mxu0 %v2494_v1  ;;  %1863 = vmatprep.mubr.msk.f32.mxu1 %vm2495_vm0, %v2494_v1  ;;  %v2586_v7 = vld [vmem:[%s3486_s1 + $0x58] sm:$0xff]  ;;  %v2592_v8 = vld [vmem:[%s3488_s3 + $0x68] sm:$0xff] }
   0x4   :  { %1799 = vmatpush3.msra.mxu0 %v2549_v2  ;;  %1832 = vmatpush3.msra.mxu1 %v2573_v5 }
   0x5   :  { %1800 = vmatprep.subr.mxu0 %v2494_v1  ;;  %1833 = vmatprep.subr.mxu1 %v2494_v1 }
   0x6   :  { %1801 = vmatpush3.msra.mxu0 %v2559_v3  ;;  %1834 = vmatpush3.msra.mxu1 %v2580_v6 }
   0x7   :  { %1802 = vmatprep.subr.mxu0 %v2494_v1 }
   0x8   :  { %1803 = vmatpush3.msra.mxu0 %v2568_v4 }
   0x9   :  { %12 = vsyncpa [#allocation4], 0  ;;  %1804 = vmatprep.subr.mxu0 %v2494_v1  ;;  %v2600_v9 = vld [vmem:[%s3486_s1 + $0x50] sm:$0xff]  ;;  %1835 = vmatprep.subr.mxu1 %v2494_v1  ;;  %v2606_v10 = vld [vmem:[%s3488_s3 + $0x60] sm:$0xff]  ;;  %vm74_vm1 = vcmask 523264   ;;  %s2496_s23 = smov 64  }
   0xa   :  { %1805 = vmatpush3.msra.mxu0 %v2586_v7  ;;  %1836 = vmatpush3.msra.mxu1 %v2592_v8  ;;  %v2614_v11 = vld [vmem:[%s3486_s1 + $0x48] sm:$0xff]  ;;  %v2620_v12 = vld [vmem:[%s3488_s3 + $0x58] sm:$0xff]  ;;  %v2628_v13 = vld [vmem:[%s3486_s1 + $0x40] sm:$0xff] }
   0xb   :  { %1806 = vmatprep.subr.mxu0 %v2494_v1  ;;  %1837 = vmatprep.subr.mxu1 %v2494_v1  ;;  %v2634_v14 = vld [vmem:[%s3488_s3 + $0x50] sm:$0xff]  ;;  %v2642_v15 = vld [vmem:[%s3486_s1 + $0x38] sm:$0xff]  ;;  %v2648_v16 = vld [vmem:[%s3488_s3 + $0x48] sm:$0xff] }
   0xc   :  { %1807 = vmatpush3.msra.mxu0 %v2600_v9  ;;  %1838 = vmatpush3.msra.mxu1 %v2606_v10  ;;  %v2656_v17 = vld [vmem:[%s3486_s1 + $0x30] sm:$0xff]  ;;  %v2665_v18 = vld [vmem:[%s3486_s1 + $0x28] sm:$0xff]  ;;  %v2673_v19 = vld [vmem:[%s3486_s1 + $0x20] sm:$0xff] }
   0xd   :  { %1808 = vmatprep.subr.mxu0 %v2494_v1  ;;  %1839 = vmatprep.subr.mxu1 %v2494_v1  ;;  %v2680_v20 = vld [vmem:[%s3486_s1 + $0x18] sm:$0xff]  ;;  %v2687_v21 = vld [vmem:[%s3486_s1 + $0x10] sm:$0xff]  ;;  %v2694_v22 = vld [vmem:[%s3486_s1 + $0x8] sm:$0xff] }
   0xe   :  { %1809 = vmatpush3.msra.mxu0 %v2614_v11  ;;  %1840 = vmatpush3.msra.mxu1 %v2620_v12  ;;  %v2701_v23 = vld [vmem:[%s3486_s1] sm:$0xff]  ;;  %v2755_v26 = vld [vmem:[%s3488_s3 + $0x38] sm:$0xff]  ;;  %v2762_v27 = vld [vmem:[%s3488_s3 + $0x30] sm:$0xff] }
   0xf   :  { %1810 = vmatprep.subr.mxu0 %v2494_v1  ;;  %1841 = vmatprep.subr.mxu1 %v2494_v1  ;;  %v73_v24 = vld [vmem:[%s3485_s0] sm:$0xff]  ;;  %v2767_v28 = vld [vmem:[%s3488_s3 + $0x28] sm:$0xff]  ;;  %v2781_v30 = vld [vmem:[%s3488_s3 + $0x18] sm:$0xff] }
  0x10   :  { %1811 = vmatpush3.msra.mxu0 %v2628_v13  ;;  %1842 = vmatpush3.msra.mxu1 %v2634_v14  ;;  %v2748_v25 = vld [vmem:[%s3488_s3 + $0x40] sm:$0xff]  ;;  %v2788_v31 = vld [vmem:[%s3488_s3 + $0x10] sm:$0xff]  ;;  %v2795_v32 = vld [vmem:[%s3488_s3 + $0x8] sm:$0xff] }
  0x11   :  { %1812 = vmatprep.subr.mxu0 %v2494_v1  ;;  %1843 = vmatprep.subr.mxu1 %v2494_v1  ;;  %v2774_v29 = vld [vmem:[%s3488_s3 + $0x20] sm:$0xff]  ;;  %v1492_v39 = vld [vmem:[%s3485_s0 + $0x8] sm:$0xff]  ;;  %v1493_v53 = vld [vmem:[%s3485_s0 + $0x10] sm:$0xff] }
  0x12   :  { %1813 = vmatpush3.msra.mxu0 %v2642_v15  ;;  %1844 = vmatpush3.msra.mxu1 %v2648_v16  ;;  %v2802_v33 = vld [vmem:[%s3488_s3] sm:$0xff] }
  0x13   :  { %1814 = vmatprep.subr.mxu0 %v2494_v1  ;;  %1845 = vmatprep.subr.mxu1 %v2494_v1  ;;  %v2811_v34 = vld [vmem:[%s3487_s2] ss:$0 sm:$0xff] }
  0x14   :  { %1815 = vmatpush3.msra.mxu0 %v2656_v17  ;;  %1846 = vmatpush3.msra.mxu1 %v2748_v25  ;;  %v2891_v42 = vld [vmem:[%s3489_s4] ss:$0 sm:$0xff] }
  0x15   :  { %1816 = vmatprep.subr.mxu0 %v2494_v1  ;;  %1847 = vmatprep.subr.mxu1 %v2494_v1 }
  0x16   :  { %1817 = vmatpush3.msra.mxu0 %v2665_v18  ;;  %1848 = vmatpush3.msra.mxu1 %v2755_v26 }
  0x17   :  { %1818 = vmatprep.subr.mxu0 %v2494_v1  ;;  %1849 = vmatprep.subr.mxu1 %v2494_v1 }
  0x18   :  { %1819 = vmatpush3.msra.mxu0 %v2673_v19  ;;  %1850 = vmatpush3.msra.mxu1 %v2762_v27 }
  0x19   :  { %1820 = vmatprep.subr.mxu0 %v2494_v1  ;;  %1851 = vmatprep.subr.mxu1 %v2494_v1 }
  0x1a   :  { %1821 = vmatpush3.msra.mxu0 %v2680_v20  ;;  %1852 = vmatpush3.msra.mxu1 %v2767_v28 }
  0x1b   :  { %1822 = vmatprep.subr.mxu0 %v2494_v1  ;;  %1853 = vmatprep.subr.mxu1 %v2494_v1 }
  0x1c   :  { %1823 = vmatpush3.msra.mxu0 %v2687_v21  ;;  %1854 = vmatpush3.msra.mxu1 %v2774_v29 }
  0x1d   :  { %1824 = vmatprep.subr.mxu0 %v2494_v1  ;;  %1855 = vmatprep.subr.mxu1 %v2494_v1 }
  0x1e   :  { %1825 = vmatpush3.msra.mxu0 %v2694_v22  ;;  %1856 = vmatpush3.msra.mxu1 %v2781_v30 }
  0x1f   :  { %1826 = vmatprep.subr.mxu0 %v2494_v1  ;;  %1857 = vmatprep.subr.mxu1 %v2494_v1 }
  0x20   :  { %1827 = vmatpush3.msra.mxu0 %v2701_v23  ;;  %1858 = vmatpush3.msra.mxu1 %v2788_v31 }
  0x21   :  { %1829 = vmatmul.mubr.msk.f32.vlgmr.msra.gmra.mxu0 %vm74_vm1, %v73_v24  ;;  %1866 = vmatprep.subr.mxu0 %v2494_v1 }
  0x22   :  { %1867 = vmatpush3.msra.mxu0 %v2543_v0  ;;  %1898 = vmatprep.mubr.msk.f32.mxu0 %vm2495_vm0, %v2494_v1 }
  0x23   :  { %1868 = vmatprep.subr.mxu0 %v2494_v1  ;;  %1859 = vmatprep.subr.mxu1 %v2494_v1 }
  0x24   :  { %1869 = vmatpush3.msra.mxu0 %v2549_v2  ;;  %1860 = vmatpush3.msra.mxu1 %v2795_v32 }
  0x25   :  { %1870 = vmatprep.subr.mxu0 %v2494_v1  ;;  %1861 = vmatprep.subr.mxu1 %v2494_v1 }
  0x26   :  { %1871 = vmatpush3.msra.mxu0 %v2559_v3  ;;  %1862 = vmatpush3.msra.mxu1 %v2802_v33 }
  0x27   :  { %1872 = vmatprep.subr.mxu0 %v2494_v1  ;;  %1901 = vmatprep.subr.mxu1 %v2494_v1 }
  0x28   :  { %1873 = vmatpush3.msra.mxu0 %v2568_v4 }
  0x29   :  { %1874 = vmatprep.subr.mxu0 %v2494_v1 }
  0x2a   :  { %1875 = vmatpush3.msra.mxu0 %v2586_v7 }
  0x2b   :  { %1876 = vmatprep.subr.mxu0 %v2494_v1 }
  0x2c   :  { %1877 = vmatpush3.msra.mxu0 %v2600_v9 }
  0x2d   :  { %1878 = vmatprep.subr.mxu0 %v2494_v1 }
  0x2e   :  { %1879 = vmatpush3.msra.mxu0 %v2614_v11 }
  0x2f   :  { %1880 = vmatprep.subr.mxu0 %v2494_v1 }
  0x30   :  { %1881 = vmatpush3.msra.mxu0 %v2628_v13 }
  0x31   :  { %1882 = vmatprep.subr.mxu0 %v2494_v1 }
  0x32   :  { %1883 = vmatpush3.msra.mxu0 %v2642_v15 }
  0x33   :  { %1884 = vmatprep.subr.mxu0 %v2494_v1 }
  0x34   :  { %1885 = vmatpush3.msra.mxu0 %v2656_v17 }
  0x35   :  { %1886 = vmatprep.subr.mxu0 %v2494_v1 }
  0x36   :  { %1887 = vmatpush3.msra.mxu0 %v2665_v18 }
  0x37   :  { %1888 = vmatprep.subr.mxu0 %v2494_v1 }
  0x38   :  { %1889 = vmatpush3.msra.mxu0 %v2673_v19 }
  0x39   :  { %1890 = vmatprep.subr.mxu0 %v2494_v1 }
  0x3a   :  { %1891 = vmatpush3.msra.mxu0 %v2680_v20 }
  0x3b   :  { %1892 = vmatprep.subr.mxu0 %v2494_v1 }
  0x3c   :  { %1893 = vmatpush3.msra.mxu0 %v2687_v21 }
  0x3d   :  { %1894 = vmatprep.subr.mxu0 %v2494_v1 }
  0x3e   :  { %1895 = vmatpush3.msra.mxu0 %v2694_v22 }
  0x3f   :  { %1896 = vmatprep.subr.mxu0 %v2494_v1 }
  0x40   :  { %1897 = vmatpush3.msra.mxu0 %v2701_v23 }
  0x41   :  { %1936 = vmatprep.subr.mxu0 %v2494_v1 }
  0xe1   :  { %v142_v35 = vpop.f32.mrf.mxu0 }
  0xe2   :  { %v143_v36 = vadd.f32 %v2811_v34, %v142_v35 }
  0xe3   :  { %v1830_v37 = vpop.f32.mrf.mxu0 }
  0xe4   :  { %2406 = vtanh.f32 %v143_v36  ;;  %v1494_v36 = vld [vmem:[%s3485_s0 + $0x18] sm:$0xff] }
  0xf1   :  { %v2407_v38 = vpop.eup %2406 }
  0xf2   :  { %223 = vrot.lane.b32.xlu0 %v2407_v38, %s2496_s23  ;;  %1864 = vmatmul.mubr.msk.f32.vlgmr.msra.gmra.mxu1 %vm74_vm1, %v2407_v38 }
  0xf3   :  { %1902 = vmatpush3.msra.mxu1 %v2573_v5  ;;  %1933 = vmatprep.mubr.msk.f32.mxu1 %vm2495_vm0, %v2494_v1 }
  0xf4   :  { %1903 = vmatprep.subr.mxu1 %v2494_v1 }
  0xf5   :  { %1904 = vmatpush3.msra.mxu1 %v2580_v6 }
  0xf6   :  { %1905 = vmatprep.subr.mxu1 %v2494_v1 }
  0xf7   :  { %1906 = vmatpush3.msra.mxu1 %v2592_v8 }
  0xf8   :  { %1907 = vmatprep.subr.mxu1 %v2494_v1 }
  0xf9   :  { %1908 = vmatpush3.msra.mxu1 %v2606_v10 }
  0xfa   :  { %1909 = vmatprep.subr.mxu1 %v2494_v1 }
  0xfb   :  { %1910 = vmatpush3.msra.mxu1 %v2620_v12 }
  0xfc   :  { %1911 = vmatprep.subr.mxu1 %v2494_v1 }
  0xfd   :  { %1912 = vmatpush3.msra.mxu1 %v2634_v14 }
  0xfe   :  { %1913 = vmatprep.subr.mxu1 %v2494_v1 }
  0xff   :  { %1914 = vmatpush3.msra.mxu1 %v2648_v16 }
 0x100   :  { %1915 = vmatprep.subr.mxu1 %v2494_v1 }
 0x101   :  { %1916 = vmatpush3.msra.mxu1 %v2748_v25 }
 0x102   :  { %1917 = vmatprep.subr.mxu1 %v2494_v1 }
 0x103   :  { %1918 = vmatpush3.msra.mxu1 %v2755_v26 }
 0x104   :  { %1919 = vmatprep.subr.mxu1 %v2494_v1 }
 0x105   :  { %1920 = vmatpush3.msra.mxu1 %v2762_v27 }
 0x106   :  { %1921 = vmatprep.subr.mxu1 %v2494_v1 }
 0x107   :  { %1922 = vmatpush3.msra.mxu1 %v2767_v28 }
 0x108   :  { %1923 = vmatprep.subr.mxu1 %v2494_v1 }
 0x109   :  { %1924 = vmatpush3.msra.mxu1 %v2774_v29 }
 0x10a   :  { %1925 = vmatprep.subr.mxu1 %v2494_v1 }
 0x10b   :  { %1926 = vmatpush3.msra.mxu1 %v2781_v30 }
 0x10c   :  { %1927 = vmatprep.subr.mxu1 %v2494_v1 }
 0x10d   :  { %1928 = vmatpush3.msra.mxu1 %v2788_v31 }
 0x10e   :  { %1929 = vmatprep.subr.mxu1 %v2494_v1 }
 0x10f   :  { %1930 = vmatpush3.msra.mxu1 %v2795_v32 }
 0x110   :  { %1931 = vmatprep.subr.mxu1 %v2494_v1 }
 0x111   :  { %1932 = vmatpush3.msra.mxu1 %v2802_v33 }
 0x112   :  { %1971 = vmatprep.subr.mxu1 %v2494_v1 }
 0x164   :  { %v224_v40 = vpop.permute.xlu0 %223 }
 0x165   :  { %v226_v41 = vsel %vm74_vm1, %v1492_v39, %v224_v40 }
 0x166   :  { %1899 = vmatmul.mubr.f32.vlgmr.msra.gmra.mxu0 %v226_v41 }
 0x167   :  { %1937 = vmatpush3.msra.mxu0 %v2543_v0  ;;  %1968 = vmatprep.mubr.msk.f32.mxu0 %vm2495_vm0, %v2494_v1 }
 0x168   :  { %1938 = vmatprep.subr.mxu0 %v2494_v1 }
 0x169   :  { %1939 = vmatpush3.msra.mxu0 %v2549_v2 }
 0x16a   :  { %1940 = vmatprep.subr.mxu0 %v2494_v1 }
 0x16b   :  { %1941 = vmatpush3.msra.mxu0 %v2559_v3 }
 0x16c   :  { %1942 = vmatprep.subr.mxu0 %v2494_v1 }
 0x16d   :  { %1943 = vmatpush3.msra.mxu0 %v2568_v4 }
 0x16e   :  { %1944 = vmatprep.subr.mxu0 %v2494_v1 }
 0x16f   :  { %1945 = vmatpush3.msra.mxu0 %v2586_v7 }
 0x170   :  { %1946 = vmatprep.subr.mxu0 %v2494_v1 }
 0x171   :  { %1947 = vmatpush3.msra.mxu0 %v2600_v9 }
 0x172   :  { %1948 = vmatprep.subr.mxu0 %v2494_v1 }
 0x173   :  { %1949 = vmatpush3.msra.mxu0 %v2614_v11 }
 0x174   :  { %1950 = vmatprep.subr.mxu0 %v2494_v1 }
 0x175   :  { %1951 = vmatpush3.msra.mxu0 %v2628_v13 }
 0x176   :  { %1952 = vmatprep.subr.mxu0 %v2494_v1 }
 0x177   :  { %1953 = vmatpush3.msra.mxu0 %v2642_v15 }
 0x178   :  { %1954 = vmatprep.subr.mxu0 %v2494_v1 }
 0x179   :  { %1955 = vmatpush3.msra.mxu0 %v2656_v17 }
 0x17a   :  { %1956 = vmatprep.subr.mxu0 %v2494_v1 }
 0x17b   :  { %1957 = vmatpush3.msra.mxu0 %v2665_v18 }
 0x17c   :  { %1958 = vmatprep.subr.mxu0 %v2494_v1 }
 0x17d   :  { %1959 = vmatpush3.msra.mxu0 %v2673_v19 }
 0x17e   :  { %1960 = vmatprep.subr.mxu0 %v2494_v1 }
 0x17f   :  { %1961 = vmatpush3.msra.mxu0 %v2680_v20 }
 0x180   :  { %1962 = vmatprep.subr.mxu0 %v2494_v1 }
 0x181   :  { %1963 = vmatpush3.msra.mxu0 %v2687_v21 }
 0x182   :  { %1964 = vmatprep.subr.mxu0 %v2494_v1 }
 0x183   :  { %1965 = vmatpush3.msra.mxu0 %v2694_v22 }
 0x184   :  { %1966 = vmatprep.subr.mxu0 %v2494_v1 }
 0x185   :  { %1967 = vmatpush3.msra.mxu0 %v2701_v23 }
 0x186   :  { %2006 = vmatprep.subr.mxu0 %v2494_v1 }
 0x1b2   :  { %v214_v43 = vpop.f32.mrf.mxu1 }
 0x1b3   :  { %v215_v44 = vadd.f32 %v2891_v42, %v214_v43 }
 0x1b4   :  { %v1865_v45 = vpop.f32.mrf.mxu1 }
 0x1b5   :  { %2408 = vtanh.f32 %v215_v44 }
 0x1c2   :  { %v2409_v46 = vpop.eup %2408 }
 0x1c3   :  { %219 = vst.msk [vmem:[#allocation2] sm:$0xff] %vm74_vm1, %v2409_v46  ;;  %299 = vrot.lane.b32.xlu0 %v2409_v46, %s2496_s23 }
 0x226   :  { %v293_v47 = vpop.f32.mrf.mxu0 }
 0x227   :  { %v294_v48 = vadd.f32 %v2811_v34, %v293_v47 }
 0x228   :  { %v1900_v49 = vpop.f32.mrf.mxu0 }
 0x229   :  { %2410 = vtanh.f32 %v294_v48 }
 0x235   :  { %v300_v50 = vpop.permute.xlu0 %299 }
 0x236   :  { %v2411_v51 = vpop.eup %2410 }
 0x237   :  { %v302_v52 = vsel %vm74_vm1, %v2411_v51, %v300_v50  ;;  %379 = vrot.lane.b32.xlu1 %v2411_v51, %s2496_s23  ;;  %v1495_v50 = vld [vmem:[%s3485_s0 + $0x20] sm:$0xff] }
 0x238   :  { %1934 = vmatmul.mubr.f32.vlgmr.msra.gmra.mxu1 %v302_v52 }
 0x239   :  { %1972 = vmatpush3.msra.mxu1 %v2573_v5  ;;  %2003 = vmatprep.mubr.msk.f32.mxu1 %vm2495_vm0, %v2494_v1 }
 0x23a   :  { %1973 = vmatprep.subr.mxu1 %v2494_v1 }
 0x23b   :  { %1974 = vmatpush3.msra.mxu1 %v2580_v6 }
 0x23c   :  { %1975 = vmatprep.subr.mxu1 %v2494_v1 }
 0x23d   :  { %1976 = vmatpush3.msra.mxu1 %v2592_v8 }
 0x23e   :  { %1977 = vmatprep.subr.mxu1 %v2494_v1 }
 0x23f   :  { %1978 = vmatpush3.msra.mxu1 %v2606_v10 }
 0x240   :  { %1979 = vmatprep.subr.mxu1 %v2494_v1 }
 0x241   :  { %1980 = vmatpush3.msra.mxu1 %v2620_v12 }
 0x242   :  { %1981 = vmatprep.subr.mxu1 %v2494_v1 }
 0x243   :  { %1982 = vmatpush3.msra.mxu1 %v2634_v14 }
 0x244   :  { %1983 = vmatprep.subr.mxu1 %v2494_v1 }
 0x245   :  { %1984 = vmatpush3.msra.mxu1 %v2648_v16 }
 0x246   :  { %1985 = vmatprep.subr.mxu1 %v2494_v1 }
 0x247   :  { %1986 = vmatpush3.msra.mxu1 %v2748_v25 }
 0x248   :  { %1987 = vmatprep.subr.mxu1 %v2494_v1 }
 0x249   :  { %1988 = vmatpush3.msra.mxu1 %v2755_v26 }
 0x24a   :  { %1989 = vmatprep.subr.mxu1 %v2494_v1 }
 0x24b   :  { %1990 = vmatpush3.msra.mxu1 %v2762_v27 }
 0x24c   :  { %1991 = vmatprep.subr.mxu1 %v2494_v1 }
 0x24d   :  { %1992 = vmatpush3.msra.mxu1 %v2767_v28 }
 0x24e   :  { %1993 = vmatprep.subr.mxu1 %v2494_v1 }
 0x24f   :  { %1994 = vmatpush3.msra.mxu1 %v2774_v29 }
 0x250   :  { %1995 = vmatprep.subr.mxu1 %v2494_v1 }
 0x251   :  { %1996 = vmatpush3.msra.mxu1 %v2781_v30 }
 0x252   :  { %1997 = vmatprep.subr.mxu1 %v2494_v1 }
 0x253   :  { %1998 = vmatpush3.msra.mxu1 %v2788_v31 }
 0x254   :  { %1999 = vmatprep.subr.mxu1 %v2494_v1 }
 0x255   :  { %2000 = vmatpush3.msra.mxu1 %v2795_v32 }
 0x256   :  { %2001 = vmatprep.subr.mxu1 %v2494_v1 }
 0x257   :  { %2002 = vmatpush3.msra.mxu1 %v2802_v33 }
 0x258   :  { %2041 = vmatprep.subr.mxu1 %v2494_v1 }
 0x2a9   :  { %v380_v54 = vpop.permute.xlu1 %379 }
 0x2aa   :  { %v382_v55 = vsel %vm74_vm1, %v1493_v53, %v380_v54 }
 0x2ab   :  { %1969 = vmatmul.mubr.f32.vlgmr.msra.gmra.mxu0 %v382_v55 }
 0x2ac   :  { %2007 = vmatpush3.msra.mxu0 %v2543_v0  ;;  %2038 = vmatprep.mubr.msk.f32.mxu0 %vm2495_vm0, %v2494_v1 }
 0x2ad   :  { %2008 = vmatprep.subr.mxu0 %v2494_v1 }
 0x2ae   :  { %2009 = vmatpush3.msra.mxu0 %v2549_v2 }
 0x2af   :  { %2010 = vmatprep.subr.mxu0 %v2494_v1 }
 0x2b0   :  { %2011 = vmatpush3.msra.mxu0 %v2559_v3 }
 0x2b1   :  { %2012 = vmatprep.subr.mxu0 %v2494_v1 }
 0x2b2   :  { %2013 = vmatpush3.msra.mxu0 %v2568_v4 }
 0x2b3   :  { %2014 = vmatprep.subr.mxu0 %v2494_v1 }
 0x2b4   :  { %2015 = vmatpush3.msra.mxu0 %v2586_v7 }
 0x2b5   :  { %2016 = vmatprep.subr.mxu0 %v2494_v1 }
 0x2b6   :  { %2017 = vmatpush3.msra.mxu0 %v2600_v9 }
 0x2b7   :  { %2018 = vmatprep.subr.mxu0 %v2494_v1 }
 0x2b8   :  { %2019 = vmatpush3.msra.mxu0 %v2614_v11 }
 0x2b9   :  { %2020 = vmatprep.subr.mxu0 %v2494_v1 }
 0x2ba   :  { %2021 = vmatpush3.msra.mxu0 %v2628_v13 }
 0x2bb   :  { %2022 = vmatprep.subr.mxu0 %v2494_v1 }
 0x2bc   :  { %2023 = vmatpush3.msra.mxu0 %v2642_v15 }
 0x2bd   :  { %2024 = vmatprep.subr.mxu0 %v2494_v1 }
 0x2be   :  { %2025 = vmatpush3.msra.mxu0 %v2656_v17 }
 0x2bf   :  { %2026 = vmatprep.subr.mxu0 %v2494_v1 }
 0x2c0   :  { %2027 = vmatpush3.msra.mxu0 %v2665_v18 }
 0x2c1   :  { %2028 = vmatprep.subr.mxu0 %v2494_v1 }
 0x2c2   :  { %2029 = vmatpush3.msra.mxu0 %v2673_v19 }
 0x2c3   :  { %2030 = vmatprep.subr.mxu0 %v2494_v1 }
 0x2c4   :  { %2031 = vmatpush3.msra.mxu0 %v2680_v20 }
 0x2c5   :  { %2032 = vmatprep.subr.mxu0 %v2494_v1 }
 0x2c6   :  { %2033 = vmatpush3.msra.mxu0 %v2687_v21 }
 0x2c7   :  { %2034 = vmatprep.subr.mxu0 %v2494_v1 }
 0x2c8   :  { %2035 = vmatpush3.msra.mxu0 %v2694_v22 }
 0x2c9   :  { %2036 = vmatprep.subr.mxu0 %v2494_v1 }
 0x2ca   :  { %2037 = vmatpush3.msra.mxu0 %v2701_v23 }
 0x2cb   :  { %2076 = vmatprep.subr.mxu0 %v2494_v1 }
 0x2f8   :  { %v369_v56 = vpop.f32.mrf.mxu1 }
 0x2f9   :  { %v370_v57 = vadd.f32 %v2891_v42, %v369_v56 }
 0x2fa   :  { %v1935_v58 = vpop.f32.mrf.mxu1 }
 0x2fb   :  { %2412 = vtanh.f32 %v370_v57  ;;  %v3204_v57 = vld [vmem:[%s3486_s1 + $0x58] sm:$0xff]  ;;  %v3211_v58 = vld [vmem:[%s3486_s1 + $0x50] sm:$0xff] }
 0x308   :  { %v2413_v59 = vpop.eup %2412 }
 0x309   :  { %375 = vst.msk [vmem:[#allocation2 + $0x8] sm:$0xff] %vm74_vm1, %v2413_v59  ;;  %455 = vrot.lane.b32.xlu1 %v2413_v59, %s2496_s23  ;;  %v3244_v59 = vld [vmem:[%s3488_s3 + $0x78] sm:$0xff] }
 0x36b   :  { %v449_v60 = vpop.f32.mrf.mxu0 }
 0x36c   :  { %v450_v61 = vadd.f32 %v2811_v34, %v449_v60  ;;  %v3260_v60 = vld [vmem:[%s3488_s3 + $0x68] sm:$0xff] }
 0x36d   :  { %v1970_v62 = vpop.f32.mrf.mxu0 }
 0x36e   :  { %2414 = vtanh.f32 %v450_v61  ;;  %v3267_v61 = vld [vmem:[%s3488_s3 + $0x60] sm:$0xff]  ;;  %v3274_v62 = vld [vmem:[%s3488_s3 + $0x58] sm:$0xff] }
 0x37b   :  { %v2415_v63 = vpop.eup %2414  ;;  %v456_v24 = vpop.permute.xlu1 %455 }
 0x37c   :  { %v458_v35 = vsel %vm74_vm1, %v2415_v63, %v456_v24  ;;  %535 = vrot.lane.b32.xlu0 %v2415_v63, %s2496_s23  ;;  %v3281_v63 = vld [vmem:[%s3488_s3 + $0x50] sm:$0xff]  ;;  %v3288_v24 = vld [vmem:[%s3488_s3 + $0x48] sm:$0xff] }
 0x37d   :  { %2004 = vmatmul.mubr.f32.vlgmr.msra.gmra.mxu1 %v458_v35  ;;  %v2457_v35 = vld [vmem:[%s3486_s1 + $0x18] sm:$0xff] }
 0x37e   :  { %2042 = vmatpush3.msra.mxu1 %v2573_v5  ;;  %2073 = vmatprep.mubr.msk.f32.mxu1 %vm2495_vm0, %v2494_v1 }
 0x37f   :  { %2043 = vmatprep.subr.mxu1 %v2494_v1 }
 0x380   :  { %2044 = vmatpush3.msra.mxu1 %v2580_v6 }
 0x381   :  { %2045 = vmatprep.subr.mxu1 %v2494_v1 }
 0x382   :  { %2046 = vmatpush3.msra.mxu1 %v2592_v8 }
 0x383   :  { %2047 = vmatprep.subr.mxu1 %v2494_v1 }
 0x384   :  { %2048 = vmatpush3.msra.mxu1 %v2606_v10 }
 0x385   :  { %2049 = vmatprep.subr.mxu1 %v2494_v1 }
 0x386   :  { %2050 = vmatpush3.msra.mxu1 %v2620_v12 }
 0x387   :  { %2051 = vmatprep.subr.mxu1 %v2494_v1 }
 0x388   :  { %2052 = vmatpush3.msra.mxu1 %v2634_v14 }
 0x389   :  { %2053 = vmatprep.subr.mxu1 %v2494_v1 }
 0x38a   :  { %2054 = vmatpush3.msra.mxu1 %v2648_v16 }
 0x38b   :  { %2055 = vmatprep.subr.mxu1 %v2494_v1 }
 0x38c   :  { %2056 = vmatpush3.msra.mxu1 %v2748_v25 }
 0x38d   :  { %2057 = vmatprep.subr.mxu1 %v2494_v1 }
 0x38e   :  { %2058 = vmatpush3.msra.mxu1 %v2755_v26 }
 0x38f   :  { %2059 = vmatprep.subr.mxu1 %v2494_v1 }
 0x390   :  { %2060 = vmatpush3.msra.mxu1 %v2762_v27 }
 0x391   :  { %2061 = vmatprep.subr.mxu1 %v2494_v1 }
 0x392   :  { %2062 = vmatpush3.msra.mxu1 %v2767_v28 }
 0x393   :  { %2063 = vmatprep.subr.mxu1 %v2494_v1 }
 0x394   :  { %2064 = vmatpush3.msra.mxu1 %v2774_v29 }
 0x395   :  { %2065 = vmatprep.subr.mxu1 %v2494_v1 }
 0x396   :  { %2066 = vmatpush3.msra.mxu1 %v2781_v30 }
 0x397   :  { %2067 = vmatprep.subr.mxu1 %v2494_v1 }
 0x398   :  { %2068 = vmatpush3.msra.mxu1 %v2788_v31 }
 0x399   :  { %2069 = vmatprep.subr.mxu1 %v2494_v1 }
 0x39a   :  { %2070 = vmatpush3.msra.mxu1 %v2795_v32 }
 0x39b   :  { %2071 = vmatprep.subr.mxu1 %v2494_v1 }
 0x39c   :  { %2072 = vmatpush3.msra.mxu1 %v2802_v33 }
 0x39d   :  { %2111 = vmatprep.subr.mxu1 %v2494_v1 }
 0x3ee   :  { %v536_v37 = vpop.permute.xlu0 %535 }
 0x3ef   :  { %v538_v38 = vsel %vm74_vm1, %v1494_v36, %v536_v37  ;;  %v2458_v36 = vld [vmem:[%s3486_s1 + $0x10] sm:$0xff]  ;;  %v2459_v37 = vld [vmem:[%s3486_s1 + $0x8] sm:$0xff] }
 0x3f0   :  { %2039 = vmatmul.mubr.f32.vlgmr.msra.gmra.mxu0 %v538_v38  ;;  %v2460_v38 = vld [vmem:[%s3486_s1] sm:$0xff] }
 0x3f1   :  { %2077 = vmatpush3.msra.mxu0 %v2543_v0  ;;  %2108 = vmatprep.mubr.msk.f32.mxu0 %vm2495_vm0, %v2494_v1 }
 0x3f2   :  { %2078 = vmatprep.subr.mxu0 %v2494_v1 }
 0x3f3   :  { %2079 = vmatpush3.msra.mxu0 %v2549_v2 }
 0x3f4   :  { %2080 = vmatprep.subr.mxu0 %v2494_v1 }
 0x3f5   :  { %2081 = vmatpush3.msra.mxu0 %v2559_v3 }
 0x3f6   :  { %2082 = vmatprep.subr.mxu0 %v2494_v1 }
 0x3f7   :  { %2083 = vmatpush3.msra.mxu0 %v2568_v4 }
 0x3f8   :  { %2084 = vmatprep.subr.mxu0 %v2494_v1 }
 0x3f9   :  { %2085 = vmatpush3.msra.mxu0 %v2586_v7 }
 0x3fa   :  { %2086 = vmatprep.subr.mxu0 %v2494_v1 }
 0x3fb   :  { %2087 = vmatpush3.msra.mxu0 %v2600_v9 }
 0x3fc   :  { %2088 = vmatprep.subr.mxu0 %v2494_v1 }
 0x3fd   :  { %2089 = vmatpush3.msra.mxu0 %v2614_v11 }
 0x3fe   :  { %2090 = vmatprep.subr.mxu0 %v2494_v1 }
 0x3ff   :  { %2091 = vmatpush3.msra.mxu0 %v2628_v13 }
 0x400   :  { %2092 = vmatprep.subr.mxu0 %v2494_v1 }
 0x401   :  { %2093 = vmatpush3.msra.mxu0 %v2642_v15 }
 0x402   :  { %2094 = vmatprep.subr.mxu0 %v2494_v1 }
 0x403   :  { %2095 = vmatpush3.msra.mxu0 %v2656_v17 }
 0x404   :  { %2096 = vmatprep.subr.mxu0 %v2494_v1 }
 0x405   :  { %2097 = vmatpush3.msra.mxu0 %v2665_v18 }
 0x406   :  { %2098 = vmatprep.subr.mxu0 %v2494_v1 }
 0x407   :  { %2099 = vmatpush3.msra.mxu0 %v2673_v19 }
 0x408   :  { %2100 = vmatprep.subr.mxu0 %v2494_v1 }
 0x409   :  { %2101 = vmatpush3.msra.mxu0 %v2680_v20 }
 0x40a   :  { %2102 = vmatprep.subr.mxu0 %v2494_v1 }
 0x40b   :  { %2103 = vmatpush3.msra.mxu0 %v2687_v21 }
 0x40c   :  { %2104 = vmatprep.subr.mxu0 %v2494_v1 }
 0x40d   :  { %2105 = vmatpush3.msra.mxu0 %v2694_v22 }
 0x40e   :  { %2106 = vmatprep.subr.mxu0 %v2494_v1 }
 0x40f   :  { %2107 = vmatpush3.msra.mxu0 %v2701_v23 }
 0x410   :  { %2146 = vmatprep.subr.mxu0 %v2494_v1 }
 0x43d   :  { %v525_v39 = vpop.f32.mrf.mxu1 }
 0x43e   :  { %v526_v40 = vadd.f32 %v2891_v42, %v525_v39 }
 0x43f   :  { %v2005_v41 = vpop.f32.mrf.mxu1 }
 0x440   :  { %2416 = vtanh.f32 %v526_v40 }
 0x44d   :  { %v2417_v43 = vpop.eup %2416 }
 0x44e   :  { %531 = vst.msk [vmem:[#allocation2 + $0x10] sm:$0xff] %vm74_vm1, %v2417_v43  ;;  %611 = vrot.lane.b32.xlu1 %v2417_v43, %s2496_s23 }
 0x4b0   :  { %v605_v44 = vpop.f32.mrf.mxu0 }
 0x4b1   :  { %v606_v45 = vadd.f32 %v2811_v34, %v605_v44 }
 0x4b2   :  { %v2040_v46 = vpop.f32.mrf.mxu0 }
 0x4b3   :  { %2418 = vtanh.f32 %v606_v45  ;;  %v3373_v45 = vld [vmem:[%s3487_s2] ss:$0 sm:$0xff] }
 0x4c0   :  { %v2419_v47 = vpop.eup %2418  ;;  %v612_v48 = vpop.permute.xlu1 %611 }
 0x4c1   :  { %v614_v49 = vsel %vm74_vm1, %v2419_v47, %v612_v48  ;;  %691 = vrot.lane.b32.xlu0 %v2419_v47, %s2496_s23 }
 0x4c2   :  { %2074 = vmatmul.mubr.f32.vlgmr.msra.gmra.mxu1 %v614_v49 }
 0x4c3   :  { %2112 = vmatpush3.msra.mxu1 %v2573_v5  ;;  %2143 = vmatprep.mubr.msk.f32.mxu1 %vm2495_vm0, %v2494_v1 }
 0x4c4   :  { %2113 = vmatprep.subr.mxu1 %v2494_v1 }
 0x4c5   :  { %2114 = vmatpush3.msra.mxu1 %v2580_v6 }
 0x4c6   :  { %2115 = vmatprep.subr.mxu1 %v2494_v1 }
 0x4c7   :  { %2116 = vmatpush3.msra.mxu1 %v2592_v8 }
 0x4c8   :  { %2117 = vmatprep.subr.mxu1 %v2494_v1 }
 0x4c9   :  { %2118 = vmatpush3.msra.mxu1 %v2606_v10 }
 0x4ca   :  { %2119 = vmatprep.subr.mxu1 %v2494_v1 }
 0x4cb   :  { %2120 = vmatpush3.msra.mxu1 %v2620_v12 }
 0x4cc   :  { %2121 = vmatprep.subr.mxu1 %v2494_v1 }
 0x4cd   :  { %2122 = vmatpush3.msra.mxu1 %v2634_v14 }
 0x4ce   :  { %2123 = vmatprep.subr.mxu1 %v2494_v1 }
 0x4cf   :  { %2124 = vmatpush3.msra.mxu1 %v2648_v16 }
 0x4d0   :  { %2125 = vmatprep.subr.mxu1 %v2494_v1 }
 0x4d1   :  { %2126 = vmatpush3.msra.mxu1 %v2748_v25 }
 0x4d2   :  { %2127 = vmatprep.subr.mxu1 %v2494_v1 }
 0x4d3   :  { %2128 = vmatpush3.msra.mxu1 %v2755_v26 }
 0x4d4   :  { %2129 = vmatprep.subr.mxu1 %v2494_v1 }
 0x4d5   :  { %2130 = vmatpush3.msra.mxu1 %v2762_v27 }
 0x4d6   :  { %2131 = vmatprep.subr.mxu1 %v2494_v1 }
 0x4d7   :  { %2132 = vmatpush3.msra.mxu1 %v2767_v28 }
 0x4d8   :  { %2133 = vmatprep.subr.mxu1 %v2494_v1 }
 0x4d9   :  { %2134 = vmatpush3.msra.mxu1 %v2774_v29 }
 0x4da   :  { %2135 = vmatprep.subr.mxu1 %v2494_v1 }
 0x4db   :  { %2136 = vmatpush3.msra.mxu1 %v2781_v30 }
 0x4dc   :  { %2137 = vmatprep.subr.mxu1 %v2494_v1 }
 0x4dd   :  { %2138 = vmatpush3.msra.mxu1 %v2788_v31 }
 0x4de   :  { %2139 = vmatprep.subr.mxu1 %v2494_v1 }
 0x4df   :  { %2140 = vmatpush3.msra.mxu1 %v2795_v32 }
 0x4e0   :  { %2141 = vmatprep.subr.mxu1 %v2494_v1 }
 0x4e1   :  { %2142 = vmatpush3.msra.mxu1 %v2802_v33 }
 0x4e2   :  { %2181 = vmatprep.subr.mxu1 %v2494_v1 }
 0x533   :  { %v692_v51 = vpop.permute.xlu0 %691 }
 0x534   :  { %v694_v52 = vsel %vm74_vm1, %v1495_v50, %v692_v51  ;;  %v2462_v51 = vld [vmem:[%s3488_s3 + $0x40] sm:$0xff] }
 0x535   :  { %2109 = vmatmul.mubr.f32.vlgmr.msra.gmra.mxu0 %v694_v52  ;;  %v2463_v52 = vld [vmem:[%s3488_s3 + $0x38] sm:$0xff] }
 0x536   :  { %2147 = vmatpush3.msra.mxu0 %v2543_v0  ;;  %2178 = vmatprep.mubr.msk.f32.mxu0 %vm2495_vm0, %v2494_v1 }
 0x537   :  { %2148 = vmatprep.subr.mxu0 %v2494_v1 }
 0x538   :  { %2149 = vmatpush3.msra.mxu0 %v2549_v2 }
 0x539   :  { %2150 = vmatprep.subr.mxu0 %v2494_v1 }
 0x53a   :  { %2151 = vmatpush3.msra.mxu0 %v2559_v3 }
 0x53b   :  { %2152 = vmatprep.subr.mxu0 %v2494_v1 }
 0x53c   :  { %2153 = vmatpush3.msra.mxu0 %v2568_v4 }
 0x53d   :  { %2154 = vmatprep.subr.mxu0 %v2494_v1 }
 0x53e   :  { %2155 = vmatpush3.msra.mxu0 %v2586_v7 }
 0x53f   :  { %2156 = vmatprep.subr.mxu0 %v2494_v1 }
 0x540   :  { %2157 = vmatpush3.msra.mxu0 %v2600_v9 }
 0x541   :  { %2158 = vmatprep.subr.mxu0 %v2494_v1 }
 0x542   :  { %2159 = vmatpush3.msra.mxu0 %v2614_v11 }
 0x543   :  { %2160 = vmatprep.subr.mxu0 %v2494_v1 }
 0x544   :  { %2161 = vmatpush3.msra.mxu0 %v2628_v13 }
 0x545   :  { %2162 = vmatprep.subr.mxu0 %v2494_v1 }
 0x546   :  { %2163 = vmatpush3.msra.mxu0 %v2642_v15 }
 0x547   :  { %2164 = vmatprep.subr.mxu0 %v2494_v1 }
 0x548   :  { %2165 = vmatpush3.msra.mxu0 %v2656_v17 }
 0x549   :  { %2166 = vmatprep.subr.mxu0 %v2494_v1 }
 0x54a   :  { %2167 = vmatpush3.msra.mxu0 %v2665_v18 }
 0x54b   :  { %2168 = vmatprep.subr.mxu0 %v2494_v1 }
 0x54c   :  { %2169 = vmatpush3.msra.mxu0 %v2673_v19 }
 0x54d   :  { %2170 = vmatprep.subr.mxu0 %v2494_v1 }
 0x54e   :  { %2171 = vmatpush3.msra.mxu0 %v2680_v20 }
 0x54f   :  { %2172 = vmatprep.subr.mxu0 %v2494_v1 }
 0x550   :  { %2173 = vmatpush3.msra.mxu0 %v2687_v21 }
 0x551   :  { %2174 = vmatprep.subr.mxu0 %v2494_v1 }
 0x552   :  { %2175 = vmatpush3.msra.mxu0 %v2694_v22 }
 0x553   :  { %2176 = vmatprep.subr.mxu0 %v2494_v1 }
 0x554   :  { %2177 = vmatpush3.msra.mxu0 %v2701_v23 }
 0x555   :  { %2216 = vmatprep.subr.mxu0 %v2494_v1 }
 0x582   :  { %v681_v0 = vpop.f32.mrf.mxu1 }
 0x583   :  { %v682_v2 = vadd.f32 %v2891_v42, %v681_v0  ;;  %v2464_v0 = vld [vmem:[%s3488_s3 + $0x30] sm:$0xff] }
 0x584   :  { %v2075_v3 = vpop.f32.mrf.mxu1 }
 0x585   :  { %2420 = vtanh.f32 %v682_v2  ;;  %v2465_v2 = vld [vmem:[%s3488_s3 + $0x28] sm:$0xff]  ;;  %v2466_v3 = vld [vmem:[%s3488_s3 + $0x20] sm:$0xff] }
 0x592   :  { %v2421_v4 = vpop.eup %2420 }
 0x593   :  { %687 = vst.msk [vmem:[#allocation2 + $0x18] sm:$0xff] %vm74_vm1, %v2421_v4  ;;  %767 = vrot.lane.b32.xlu1 %v2421_v4, %s2496_s23  ;;  %v2467_v4 = vld [vmem:[%s3488_s3 + $0x18] sm:$0xff] }
 0x5f5   :  { %v761_v7 = vpop.f32.mrf.mxu0 }
 0x5f6   :  { %v762_v9 = vadd.f32 %v2811_v34, %v761_v7  ;;  %v2468_v7 = vld [vmem:[%s3488_s3 + $0x10] sm:$0xff] }
 0x5f7   :  { %v2110_v53 = vpop.f32.mrf.mxu0 }
 0x5f8   :  { %2422 = vtanh.f32 %v762_v9  ;;  %v2469_v9 = vld [vmem:[%s3488_s3 + $0x8] sm:$0xff]  ;;  %v2470_v53 = vld [vmem:[%s3488_s3] sm:$0xff] }
 0x605   :  { %v2423_v54 = vpop.eup %2422  ;;  %v768_v55 = vpop.permute.xlu1 %767 }
 0x606   :  { %v770_v56 = vsel %vm74_vm1, %v2423_v54, %v768_v55  ;;  %847 = vrot.lane.b32.xlu0 %v2423_v54, %s2496_s23  ;;  %v1498_v54 = vld [vmem:[%s3485_s0 + $0x38] sm:$0xff] }
 0x607   :  { %2144 = vmatmul.mubr.f32.vlgmr.msra.gmra.mxu1 %v770_v56 }
 0x608   :  { %2182 = vmatpush3.msra.mxu1 %v2573_v5  ;;  %2213 = vmatprep.mubr.msk.f32.mxu1 %vm2495_vm0, %v2494_v1  ;;  %v1496_v5 = vld [vmem:[%s3485_s0 + $0x28] sm:$0xff] }
 0x609   :  { %2183 = vmatprep.subr.mxu1 %v2494_v1 }
 0x60a   :  { %2184 = vmatpush3.msra.mxu1 %v2580_v6 }
 0x60b   :  { %2185 = vmatprep.subr.mxu1 %v2494_v1 }
 0x60c   :  { %2186 = vmatpush3.msra.mxu1 %v2592_v8 }
 0x60d   :  { %2187 = vmatprep.subr.mxu1 %v2494_v1 }
 0x60e   :  { %2188 = vmatpush3.msra.mxu1 %v2606_v10  ;;  %v3174_v10 = vld [vmem:[%s3486_s1 + $0x78] sm:$0xff] }
 0x60f   :  { %2189 = vmatprep.subr.mxu1 %v2494_v1 }
 0x610   :  { %2190 = vmatpush3.msra.mxu1 %v2620_v12  ;;  %v3183_v12 = vld [vmem:[%s3486_s1 + $0x70] sm:$0xff] }
 0x611   :  { %2191 = vmatprep.subr.mxu1 %v2494_v1 }
 0x612   :  { %2192 = vmatpush3.msra.mxu1 %v2634_v14  ;;  %v3190_v14 = vld [vmem:[%s3486_s1 + $0x68] sm:$0xff] }
 0x613   :  { %2193 = vmatprep.subr.mxu1 %v2494_v1 }
 0x614   :  { %2194 = vmatpush3.msra.mxu1 %v2648_v16  ;;  %v3197_v16 = vld [vmem:[%s3486_s1 + $0x60] sm:$0xff] }
 0x615   :  { %2195 = vmatprep.subr.mxu1 %v2494_v1 }
 0x616   :  { %2196 = vmatpush3.msra.mxu1 %v2748_v25 }
 0x617   :  { %2197 = vmatprep.subr.mxu1 %v2494_v1 }
 0x618   :  { %2198 = vmatpush3.msra.mxu1 %v2755_v26 }
 0x619   :  { %2199 = vmatprep.subr.mxu1 %v2494_v1 }
 0x61a   :  { %2200 = vmatpush3.msra.mxu1 %v2762_v27 }
 0x61b   :  { %2201 = vmatprep.subr.mxu1 %v2494_v1 }
 0x61c   :  { %2202 = vmatpush3.msra.mxu1 %v2767_v28 }
 0x61d   :  { %2203 = vmatprep.subr.mxu1 %v2494_v1 }
 0x61e   :  { %2204 = vmatpush3.msra.mxu1 %v2774_v29 }
 0x61f   :  { %2205 = vmatprep.subr.mxu1 %v2494_v1 }
 0x620   :  { %2206 = vmatpush3.msra.mxu1 %v2781_v30 }
 0x621   :  { %2207 = vmatprep.subr.mxu1 %v2494_v1 }
 0x622   :  { %2208 = vmatpush3.msra.mxu1 %v2788_v31 }
 0x623   :  { %2209 = vmatprep.subr.mxu1 %v2494_v1 }
 0x624   :  { %2210 = vmatpush3.msra.mxu1 %v2795_v32 }
 0x625   :  { %2211 = vmatprep.subr.mxu1 %v2494_v1 }
 0x626   :  { %2212 = vmatpush3.msra.mxu1 %v2802_v33 }
 0x627   :  { %2251 = vmatprep.subr.mxu1 %v2494_v1 }
 0x678   :  { %v848_v6 = vpop.permute.xlu0 %847 }
 0x679   :  { %v850_v8 = vsel %vm74_vm1, %v1496_v5, %v848_v6  ;;  %v1326_v5 = vld [vmem:[%s3490_s5 + $0x30] sm:$0xff]  ;;  %v1325_v6 = vld [vmem:[%s3490_s5 + $0x28] sm:$0xff] }
 0x67a   :  { %2179 = vmatmul.mubr.f32.vlgmr.msra.gmra.mxu0 %v850_v8  ;;  %v1324_v8 = vld [vmem:[%s3490_s5 + $0x20] sm:$0xff] }
 0x67b   :  { %2217 = vmatpush3.msra.mxu0 %v3174_v10  ;;  %2248 = vmatprep.mubr.msk.f32.mxu0 %vm2495_vm0, %v2494_v1 }
 0x67c   :  { %2218 = vmatprep.subr.mxu0 %v2494_v1 }
 0x67d   :  { %2219 = vmatpush3.msra.mxu0 %v3183_v12 }
 0x67e   :  { %2220 = vmatprep.subr.mxu0 %v2494_v1 }
 0x67f   :  { %2221 = vmatpush3.msra.mxu0 %v3190_v14 }
 0x680   :  { %2222 = vmatprep.subr.mxu0 %v2494_v1 }
 0x681   :  { %2223 = vmatpush3.msra.mxu0 %v3197_v16 }
 0x682   :  { %2224 = vmatprep.subr.mxu0 %v2494_v1 }
 0x683   :  { %2225 = vmatpush3.msra.mxu0 %v3204_v57 }
 0x684   :  { %2226 = vmatprep.subr.mxu0 %v2494_v1 }
 0x685   :  { %2227 = vmatpush3.msra.mxu0 %v3211_v58 }
 0x686   :  { %2228 = vmatprep.subr.mxu0 %v2494_v1 }
 0x687   :  { %2229 = vmatpush3.msra.mxu0 %v2614_v11 }
 0x688   :  { %2230 = vmatprep.subr.mxu0 %v2494_v1 }
 0x689   :  { %2231 = vmatpush3.msra.mxu0 %v2628_v13 }
 0x68a   :  { %2232 = vmatprep.subr.mxu0 %v2494_v1 }
 0x68b   :  { %2233 = vmatpush3.msra.mxu0 %v2642_v15 }
 0x68c   :  { %2234 = vmatprep.subr.mxu0 %v2494_v1 }
 0x68d   :  { %2235 = vmatpush3.msra.mxu0 %v2656_v17 }
 0x68e   :  { %2236 = vmatprep.subr.mxu0 %v2494_v1 }
 0x68f   :  { %2237 = vmatpush3.msra.mxu0 %v2665_v18 }
 0x690   :  { %2238 = vmatprep.subr.mxu0 %v2494_v1 }
 0x691   :  { %2239 = vmatpush3.msra.mxu0 %v2673_v19 }
 0x692   :  { %2240 = vmatprep.subr.mxu0 %v2494_v1 }
 0x693   :  { %2241 = vmatpush3.msra.mxu0 %v2680_v20 }
 0x694   :  { %2242 = vmatprep.subr.mxu0 %v2494_v1 }
 0x695   :  { %2243 = vmatpush3.msra.mxu0 %v2687_v21 }
 0x696   :  { %2244 = vmatprep.subr.mxu0 %v2494_v1 }
 0x697   :  { %2245 = vmatpush3.msra.mxu0 %v2694_v22 }
 0x698   :  { %2246 = vmatprep.subr.mxu0 %v2494_v1 }
 0x699   :  { %2247 = vmatpush3.msra.mxu0 %v2701_v23 }
 0x69a   :  { %2286 = vmatprep.subr.mxu0 %v2494_v1 }
 0x6c7   :  { %v837_v11 = vpop.f32.mrf.mxu1 }
 0x6c8   :  { %v838_v13 = vadd.f32 %v2891_v42, %v837_v11  ;;  %v1315_v11 = vld [vmem:[#allocation2 + $0x18] sm:$0xff] }
 0x6c9   :  { %v2145_v15 = vpop.f32.mrf.mxu1 }
 0x6ca   :  { %2424 = vtanh.f32 %v838_v13  ;;  %v2471_v15 = vld [vmem:[%s3489_s4] ss:$0 sm:$0xff]  ;;  %s2497_s4 = smov [#allocation3]  }
 0x6d7   :  { %v2425_v17 = vpop.eup %2424 }
 0x6d8   :  { %843 = vst.msk [vmem:[#allocation2 + $0x20] sm:$0xff] %vm74_vm1, %v2425_v17  ;;  %923 = vrot.lane.b32.xlu1 %v2425_v17, %s2496_s23 }
 0x73a   :  { %v917_v18 = vpop.f32.mrf.mxu0 }
 0x73b   :  { %v918_v19 = vadd.f32 %v2811_v34, %v917_v18  ;;  %v3253_v34 = vld [vmem:[%s3488_s3 + $0x70] sm:$0xff] }
 0x73c   :  { %v2180_v20 = vpop.f32.mrf.mxu0 }
 0x73d   :  { %2426 = vtanh.f32 %v918_v19 }
 0x74a   :  { %v2427_v21 = vpop.eup %2426  ;;  %v924_v22 = vpop.permute.xlu1 %923 }
 0x74b   :  { %v926_v23 = vsel %vm74_vm1, %v2427_v21, %v924_v22  ;;  %1003 = vrot.lane.b32.xlu0 %v2427_v21, %s2496_s23 }
 0x74c   :  { %2214 = vmatmul.mubr.f32.vlgmr.msra.gmra.mxu1 %v926_v23  ;;  %v1499_v23 = vld [vmem:[%s3491_s6] ss:$0 sm:$0xff]  ;;  %s1477_s6 = sshll.u32 %s2497_s4, 4  ;;  %s1478_s6 = int_to_ptr.vmem [resolvable:$true] %s1477_s6 }
 0x74d   :  { %2252 = vmatpush3.msra.mxu1 %v3244_v59  ;;  %2283 = vmatprep.mubr.msk.f32.mxu1 %vm2495_vm0, %v2494_v1  ;;  %p2477_p1 = scmp.lt.s32.totalorder %s1478_s6, %s1478_s6 }
 0x74e   :  { %2253 = vmatprep.subr.mxu1 %v2494_v1 }
 0x74f   :  { %2254 = vmatpush3.msra.mxu1 %v3253_v34 }
 0x750   :  { %2255 = vmatprep.subr.mxu1 %v2494_v1 }
 0x751   :  { %2256 = vmatpush3.msra.mxu1 %v3260_v60 }
 0x752   :  { %2257 = vmatprep.subr.mxu1 %v2494_v1 }
 0x753   :  { %2258 = vmatpush3.msra.mxu1 %v3267_v61 }
 0x754   :  { %2259 = vmatprep.subr.mxu1 %v2494_v1 }
 0x755   :  { %2260 = vmatpush3.msra.mxu1 %v3274_v62 }
 0x756   :  { %2261 = vmatprep.subr.mxu1 %v2494_v1 }
 0x757   :  { %2262 = vmatpush3.msra.mxu1 %v3281_v63 }
 0x758   :  { %2263 = vmatprep.subr.mxu1 %v2494_v1 }
 0x759   :  { %2264 = vmatpush3.msra.mxu1 %v3288_v24 }
 0x75a   :  { %2265 = vmatprep.subr.mxu1 %v2494_v1 }
 0x75b   :  { %2266 = vmatpush3.msra.mxu1 %v2748_v25  ;;  %v1497_v25 = vld [vmem:[%s3485_s0 + $0x30] sm:$0xff] }
 0x75c   :  { %2267 = vmatprep.subr.mxu1 %v2494_v1 }
 0x75d   :  { %2268 = vmatpush3.msra.mxu1 %v2755_v26 }
 0x75e   :  { %2269 = vmatprep.subr.mxu1 %v2494_v1 }
 0x75f   :  { %2270 = vmatpush3.msra.mxu1 %v2762_v27 }
 0x760   :  { %2271 = vmatprep.subr.mxu1 %v2494_v1 }
 0x761   :  { %2272 = vmatpush3.msra.mxu1 %v2767_v28  ;;  %v2451_v28 = vld [vmem:[%s3486_s1 + $0x48] sm:$0xff] }
 0x762   :  { %2273 = vmatprep.subr.mxu1 %v2494_v1 }
 0x763   :  { %2274 = vmatpush3.msra.mxu1 %v2774_v29  ;;  %v2452_v29 = vld [vmem:[%s3486_s1 + $0x40] sm:$0xff] }
 0x764   :  { %2275 = vmatprep.subr.mxu1 %v2494_v1 }
 0x765   :  { %2276 = vmatpush3.msra.mxu1 %v2781_v30  ;;  %v2453_v30 = vld [vmem:[%s3486_s1 + $0x38] sm:$0xff] }
 0x766   :  { %2277 = vmatprep.subr.mxu1 %v2494_v1 }
 0x767   :  { %2278 = vmatpush3.msra.mxu1 %v2788_v31  ;;  %v2454_v31 = vld [vmem:[%s3486_s1 + $0x30] sm:$0xff] }
 0x768   :  { %2279 = vmatprep.subr.mxu1 %v2494_v1 }
 0x769   :  { %2280 = vmatpush3.msra.mxu1 %v2795_v32  ;;  %v2455_v32 = vld [vmem:[%s3486_s1 + $0x28] sm:$0xff] }
 0x76a   :  { %2281 = vmatprep.subr.mxu1 %v2494_v1 }
 0x76b   :  { %2282 = vmatpush3.msra.mxu1 %v2802_v33  ;;  %v2456_v33 = vld [vmem:[%s3486_s1 + $0x20] sm:$0xff] }
 0x76c   :  { %2321 = vmatprep.subr.mxu1 %v2494_v1 }
 0x7bd   :  { %v1004_v26 = vpop.permute.xlu0 %1003 }
 0x7be   :  { %v1006_v27 = vsel %vm74_vm1, %v1497_v25, %v1004_v26 }
 0x7bf   :  { %2249 = vmatmul.mubr.f32.vlgmr.msra.gmra.mxu0 %v1006_v27 }
 0x7c0   :  { %2287 = vmatpush3.msra.mxu0 %v3174_v10  ;;  %2318 = vmatprep.mubr.msk.f32.mxu0 %vm2495_vm0, %v2494_v1  ;;  %v1323_v10 = vld [vmem:[%s3490_s5 + $0x18] sm:$0xff] }
 0x7c1   :  { %2288 = vmatprep.subr.mxu0 %v2494_v1 }
 0x7c2   :  { %2289 = vmatpush3.msra.mxu0 %v3183_v12  ;;  %v1322_v12 = vld [vmem:[%s3490_s5 + $0x10] sm:$0xff] }
 0x7c3   :  { %2290 = vmatprep.subr.mxu0 %v2494_v1 }
 0x7c4   :  { %2291 = vmatpush3.msra.mxu0 %v3190_v14  ;;  %v1321_v14 = vld [vmem:[%s3490_s5 + $0x8] sm:$0xff] }
 0x7c5   :  { %2292 = vmatprep.subr.mxu0 %v2494_v1 }
 0x7c6   :  { %2293 = vmatpush3.msra.mxu0 %v3197_v16  ;;  %v1320_v16 = vld [vmem:[%s3490_s5] sm:$0xff] }
 0x7c7   :  { %2294 = vmatprep.subr.mxu0 %v2494_v1 }
 0x7c8   :  { %2295 = vmatpush3.msra.mxu0 %v3204_v57  ;;  %v1313_v57 = vld [vmem:[#allocation2 + $0x8] sm:$0xff] }
 0x7c9   :  { %2296 = vmatprep.subr.mxu0 %v2494_v1 }
 0x7ca   :  { %2297 = vmatpush3.msra.mxu0 %v3211_v58  ;;  %v1314_v58 = vld [vmem:[#allocation2 + $0x10] sm:$0xff] }
 0x7cb   :  { %2298 = vmatprep.subr.mxu0 %v2494_v1 }
 0x7cc   :  { %2299 = vmatpush3.msra.mxu0 %v2451_v28 }
 0x7cd   :  { %2300 = vmatprep.subr.mxu0 %v2494_v1 }
 0x7ce   :  { %2301 = vmatpush3.msra.mxu0 %v2452_v29 }
 0x7cf   :  { %2302 = vmatprep.subr.mxu0 %v2494_v1 }
 0x7d0   :  { %2303 = vmatpush3.msra.mxu0 %v2453_v30 }
 0x7d1   :  { %2304 = vmatprep.subr.mxu0 %v2494_v1 }
 0x7d2   :  { %2305 = vmatpush3.msra.mxu0 %v2454_v31 }
 0x7d3   :  { %2306 = vmatprep.subr.mxu0 %v2494_v1 }
 0x7d4   :  { %2307 = vmatpush3.msra.mxu0 %v2455_v32 }
 0x7d5   :  { %2308 = vmatprep.subr.mxu0 %v2494_v1 }
 0x7d6   :  { %2309 = vmatpush3.msra.mxu0 %v2456_v33 }
 0x7d7   :  { %2310 = vmatprep.subr.mxu0 %v2494_v1 }
 0x7d8   :  { %2311 = vmatpush3.msra.mxu0 %v2457_v35 }
 0x7d9   :  { %2312 = vmatprep.subr.mxu0 %v2494_v1 }
 0x7da   :  { %2313 = vmatpush3.msra.mxu0 %v2458_v36 }
 0x7db   :  { %2314 = vmatprep.subr.mxu0 %v2494_v1 }
 0x7dc   :  { %2315 = vmatpush3.msra.mxu0 %v2459_v37 }
 0x7dd   :  { %2316 = vmatprep.subr.mxu0 %v2494_v1 }
 0x7de   :  { %2317 = vmatpush3.msra.mxu0 %v2460_v38 }
 0x80c   :  { %v993_v39 = vpop.f32.mrf.mxu1 }
 0x80d   :  { %v994_v40 = vadd.f32 %v2891_v42, %v993_v39  ;;  %v3379_v42 = vld [vmem:[%s3490_s5 + $0x38] sm:$0xff] }
 0x80e   :  { %v2215_v41 = vpop.f32.mrf.mxu1  ;;  %2356 = vmatprep.subr.mxu0 %v3379_v42 }
 0x80f   :  { %2428 = vtanh.f32 %v994_v40 }
 0x81c   :  { %v2429_v43 = vpop.eup %2428 }
 0x81d   :  { %999 = vst.msk [vmem:[#allocation2 + $0x28] sm:$0xff] %vm74_vm1, %v2429_v43  ;;  %1079 = vrot.lane.b32.xlu1 %v2429_v43, %s2496_s23 }
 0x824   :  { %v1317_v30 = vld [vmem:[#allocation2 + $0x28] sm:$0xff] }
 0x87f   :  { %v1073_v44 = vpop.f32.mrf.mxu0 }
 0x880   :  { %v1074_v46 = vadd.f32 %v3373_v45, %v1073_v44 }
 0x881   :  { %v2250_v47 = vpop.f32.mrf.mxu0 }
 0x882   :  { %2430 = vtanh.f32 %v1074_v46 }
 0x88f   :  { %v2431_v48 = vpop.eup %2430  ;;  %v1080_v49 = vpop.permute.xlu1 %1079 }
 0x890   :  { %v1082_v50 = vsel %vm74_vm1, %v2431_v48, %v1080_v49  ;;  %1159 = vrot.lane.b32.xlu0 %v2431_v48, %s2496_s23 }
 0x891   :  { %2284 = vmatmul.mubr.f32.vlgmr.msra.gmra.mxu1 %v1082_v50 }
 0x892   :  { %2322 = vmatpush3.msra.mxu1 %v3244_v59  ;;  %2353 = vmatprep.mubr.msk.f32.mxu1 %vm2495_vm0, %v2494_v1 }
 0x893   :  { %2323 = vmatprep.subr.mxu1 %v2494_v1 }
 0x894   :  { %2324 = vmatpush3.msra.mxu1 %v3253_v34 }
 0x895   :  { %2325 = vmatprep.subr.mxu1 %v2494_v1 }
 0x896   :  { %2326 = vmatpush3.msra.mxu1 %v3260_v60 }
 0x897   :  { %2327 = vmatprep.subr.mxu1 %v2494_v1 }
 0x898   :  { %2328 = vmatpush3.msra.mxu1 %v3267_v61 }
 0x899   :  { %2329 = vmatprep.subr.mxu1 %v2494_v1 }
 0x89a   :  { %2330 = vmatpush3.msra.mxu1 %v3274_v62 }
 0x89b   :  { %2331 = vmatprep.subr.mxu1 %v2494_v1 }
 0x89c   :  { %2332 = vmatpush3.msra.mxu1 %v3281_v63 }
 0x89d   :  { %2333 = vmatprep.subr.mxu1 %v2494_v1 }
 0x89e   :  { %2334 = vmatpush3.msra.mxu1 %v3288_v24  ;;  %v1316_v24 = vld [vmem:[#allocation2 + $0x20] sm:$0xff] }
 0x89f   :  { %2335 = vmatprep.subr.mxu1 %v2494_v1 }
 0x8a0   :  { %2336 = vmatpush3.msra.mxu1 %v2462_v51 }
 0x8a1   :  { %2337 = vmatprep.subr.mxu1 %v2494_v1 }
 0x8a2   :  { %2338 = vmatpush3.msra.mxu1 %v2463_v52 }
 0x8a3   :  { %2339 = vmatprep.subr.mxu1 %v2494_v1 }
 0x8a4   :  { %2340 = vmatpush3.msra.mxu1 %v2464_v0 }
 0x8a5   :  { %2341 = vmatprep.subr.mxu1 %v2494_v1 }
 0x8a6   :  { %2342 = vmatpush3.msra.mxu1 %v2465_v2 }
 0x8a7   :  { %2343 = vmatprep.subr.mxu1 %v2494_v1 }
 0x8a8   :  { %2344 = vmatpush3.msra.mxu1 %v2466_v3 }
 0x8a9   :  { %2345 = vmatprep.subr.mxu1 %v2494_v1 }
 0x8aa   :  { %2346 = vmatpush3.msra.mxu1 %v2467_v4 }
 0x8ab   :  { %2347 = vmatprep.subr.mxu1 %v2494_v1 }
 0x8ac   :  { %2348 = vmatpush3.msra.mxu1 %v2468_v7 }
 0x8ad   :  { %2349 = vmatprep.subr.mxu1 %v2494_v1 }
 0x8ae   :  { %2350 = vmatpush3.msra.mxu1 %v2469_v9 }
 0x8af   :  { %2351 = vmatprep.subr.mxu1 %v2494_v1  ;;  %v1312_v1 = vld [vmem:[#allocation2] sm:$0xff] }
 0x8b0   :  { %2352 = vmatpush3.msra.mxu1 %v2470_v53 }
 0x8b1   :  { %2384 = vmatprep.subr.mxu1 %v3379_v42 }
 0x902   :  { %v1160_v55 = vpop.permute.xlu0 %1159 }
 0x903   :  { %v1162_v56 = vsel %vm74_vm1, %v1498_v54, %v1160_v55 }
 0x904   :  { %2319 = vmatmul.mubr.f32.vlgmr.msra.gmra.mxu0 %v1162_v56 }
 0x905   :  { %2357 = vmatpush3.msra.mxu0 %v3379_v42  ;;  %2372 = vmatprep.mubr.msk.f32.mxu0 %vm74_vm1, %v1312_v1 }
 0x906   :  { %2358 = vmatprep.subr.mxu0 %v1326_v5 }
 0x907   :  { %2359 = vmatpush3.msra.mxu0 %v1326_v5 }
 0x908   :  { %2360 = vmatprep.subr.mxu0 %v1325_v6 }
 0x909   :  { %2361 = vmatpush3.msra.mxu0 %v1325_v6 }
 0x90a   :  { %2362 = vmatprep.subr.mxu0 %v1324_v8 }
 0x90b   :  { %2363 = vmatpush3.msra.mxu0 %v1324_v8 }
 0x90c   :  { %2364 = vmatprep.subr.mxu0 %v1323_v10 }
 0x90d   :  { %2365 = vmatpush3.msra.mxu0 %v1323_v10 }
 0x90e   :  { %2366 = vmatprep.subr.mxu0 %v1322_v12 }
 0x90f   :  { %2367 = vmatpush3.msra.mxu0 %v1322_v12 }
 0x910   :  { %2368 = vmatprep.subr.mxu0 %v1321_v14 }
 0x911   :  { %2369 = vmatpush3.msra.mxu0 %v1321_v14 }
 0x912   :  { %2370 = vmatprep.subr.mxu0 %v1320_v16 }
 0x913   :  { %2371 = vmatpush3.msra.mxu0 %v1320_v16 }
 0x914   :  { %2373 = vmatmul.mubr.msk.f32.vlgmr.msra.gmra.mxu0 %vm74_vm1, %v1313_v57 }
 0x915   :  { %2375 = vmatprep.mubr.msk.f32.mxu0 %vm74_vm1, %v1314_v58 }
 0x918   :  { %2376 = vmatmul.mubr.msk.f32.gmra.mxu0 %vm74_vm1, %v1315_v11 }
 0x951   :  { %v1149_v13 = vpop.f32.mrf.mxu1 }
 0x952   :  { %v1150_v17 = vadd.f32 %v2471_v15, %v1149_v13 }
 0x953   :  { %v2285_v18 = vpop.f32.mrf.mxu1 }
 0x954   :  { %2432 = vtanh.f32 %v1150_v17 }
 0x961   :  { %v2433_v19 = vpop.eup %2432 }
 0x962   :  { %1155 = vst.msk [vmem:[#allocation2 + $0x30] sm:$0xff] %vm74_vm1, %v2433_v19  ;;  %1235 = vrot.lane.b32.xlu1 %v2433_v19, %s2496_s23  ;;  %s2472_s23 = scalar_lea.vmem %s1478_s6, 1024 }
 0x963   :  { %p2473_p0 = scmp.ne.s32.totalorder %s1478_s6, %s2472_s23  ;;  %p2478_p2 = scmp.lt.s32.totalorder %s2472_s23, %s2472_s23 }
 0x965   :  { %p2479_p3 = por %p2478_p2, %p2477_p1 }
 0x967   :  { %p2480_p4 = pnand %p2479_p3, %p2473_p0 }
 0x969   :  { %v1318_v31 = vld [vmem:[#allocation2 + $0x30] sm:$0xff] }
 0x9c4   :  { %v1229_v20 = vpop.f32.mrf.mxu0 }
 0x9c5   :  { %v1230_v21 = vadd.f32 %v3373_v45, %v1229_v20 }
 0x9c6   :  { %v2320_v22 = vpop.f32.mrf.mxu0 }
 0x9c7   :  { %2434 = vtanh.f32 %v1230_v21 }
 0x9d4   :  { %v2435_v59 = vpop.eup %2434  ;;  %v2374_v34 = vpop.f32.mrf.mxu0 }
 0x9d5   :  { %v1236_v60 = vpop.permute.xlu1 %1235  ;;  %v1431_v61 = vadd.f32 %v2374_v34, %v1499_v23 }
 0x9d6   :  { %v1238_v62 = vsel %vm74_vm1, %v2435_v59, %v1236_v60  ;;  %v1425_v63 = vpop.f32.mrf.mxu0 }
 0x9d7   :  { %2354 = vmatmul.mubr.f32.vlgmr.msra.gmra.mxu1 %v1238_v62  ;;  %1465 = vst [vmem:[#allocation3 + $0x8] sm:$0xff] %v1431_v61  ;;  %v1426_v25 = vadd.f32 %v1499_v23, %v1425_v63 }
 0x9d8   :  { %2392 = vmatpush3.msra.mxu1 %v3379_v42  ;;  %2378 = vmatprep.mubr.msk.f32.mxu1 %vm74_vm1, %v1316_v24  ;;  %v2377_v26 = vpop.f32.mrf.mxu0 }
 0x9d9   :  { %2385 = vmatprep.subr.mxu1 %v1326_v5  ;;  %1464 = vst [vmem:[#allocation3] sm:$0xff] %v1426_v25  ;;  %v1441_v27 = vadd.f32 %v2377_v26, %v1499_v23 }
 0x9da   :  { %2393 = vmatpush3.msra.mxu1 %v1326_v5  ;;  %v1435_v28 = vpop.f32.mrf.mxu0 }
 0x9db   :  { %2386 = vmatprep.subr.mxu1 %v1325_v6  ;;  %1467 = vst [vmem:[#allocation3 + $0x18] sm:$0xff] %v1441_v27  ;;  %v1436_v29 = vadd.f32 %v1499_v23, %v1435_v28 }
 0x9dc   :  { %2394 = vmatpush3.msra.mxu1 %v1325_v6 }
 0x9dd   :  { %2387 = vmatprep.subr.mxu1 %v1324_v8  ;;  %1466 = vst [vmem:[#allocation3 + $0x10] sm:$0xff] %v1436_v29 }
 0x9de   :  { %2395 = vmatpush3.msra.mxu1 %v1324_v8 }
 0x9df   :  { %2388 = vmatprep.subr.mxu1 %v1323_v10 }
 0x9e0   :  { %2396 = vmatpush3.msra.mxu1 %v1323_v10 }
 0x9e1   :  { %2389 = vmatprep.subr.mxu1 %v1322_v12 }
 0x9e2   :  { %2397 = vmatpush3.msra.mxu1 %v1322_v12 }
 0x9e3   :  { %2390 = vmatprep.subr.mxu1 %v1321_v14 }
 0x9e4   :  { %2398 = vmatpush3.msra.mxu1 %v1321_v14 }
 0x9e5   :  { %2391 = vmatprep.subr.mxu1 %v1320_v16 }
 0x9e6   :  { %2399 = vmatpush3.msra.mxu1 %v1320_v16 }
 0x9e7   :  { %2379 = vmatmul.mubr.msk.f32.vlgmr.msra.gmra.mxu1 %vm74_vm1, %v1317_v30 }
 0x9e8   :  { %2381 = vmatprep.mubr.msk.f32.mxu1 %vm74_vm1, %v1318_v31 }
 0xa97   :  { %v1305_v32 = vpop.f32.mrf.mxu1 }
 0xa98   :  { %v1306_v33 = vadd.f32 %v2471_v15, %v1305_v32 }
 0xa99   :  { %v2355_v35 = vpop.f32.mrf.mxu1 }
 0xa9a   :  { %2436 = vtanh.f32 %v1306_v33 }
 0xaa7   :  { %v2437_v36 = vpop.eup %2436  ;;  %v2380_v37 = vpop.f32.mrf.mxu1 }
 0xaa8   :  { %1311 = vst.msk [vmem:[#allocation2 + $0x38] sm:$0xff] %vm74_vm1, %v2437_v36  ;;  %v1451_v38 = vadd.f32 %v2380_v37, %v1499_v23 }
 0xaa9   :  { %v1445_v39 = vpop.f32.mrf.mxu1 }
 0xaaa   :  { %1469 = vst [vmem:[#allocation3 + $0x28] sm:$0xff] %v1451_v38  ;;  %v1446_v40 = vadd.f32 %v1499_v23, %v1445_v39 }
 0xaac   :  { %1468 = vst [vmem:[#allocation3 + $0x20] sm:$0xff] %v1446_v40 }
 0xaaf   :  { %v1319_v41 = vld [vmem:[#allocation2 + $0x38] sm:$0xff] }
 0xab0   :  { %2382 = vmatmul.mubr.msk.f32.gmra.mxu1 %vm74_vm1, %v1319_v41 }
 0xb70   :  { %v2383_v43 = vpop.f32.mrf.mxu1 }
 0xb71   :  { %v1461_v44 = vadd.f32 %v2383_v43, %v1499_v23 }
 0xb72   :  { %v1455_v45 = vpop.f32.mrf.mxu1 }
 0xb73   :  { %1471 = vst [vmem:[#allocation3 + $0x38] sm:$0xff] %v1461_v44  ;;  %v1456_v46 = vadd.f32 %v1499_v23, %v1455_v45 }
 0xb75   :  { %1470 = vst [vmem:[#allocation3 + $0x30] sm:$0xff] %v1456_v46 }
 0xb76   :  { %2483 = shalt.err (!%p2480_p4)
}
 0xb77   :  { %s2498_s8 = smov 128   ;;  %s2499_s9 = smov 8  }
 0xb78   :  { %1483 = dma.vmem_to_hbm [thread:$0]  %s1478_s6, 1024, %s3492_s7, [#allocation4], %s2498_s8, %s2498_s8, %s2499_s9  }
 0xb79   :  { %2492 = dma.done.wait [#allocation4], 1024  }
 0xb7a   :  { %2493 = vsyncadd [#allocation4], 4294966272 }
 0xb7b   :  { %1487 = vsyncpa [#allocation4], 1 }

</bundles_post_ra>
